<compile_context>
chip_gen: v7x
topology: tpu7x:2x2x1
jax: 0.10.0
libtpu: 0.0.40
codegen_flags: <defaults>
</compile_context>

<pallas_src>
import functools

import jax
import jax.numpy as jnp
from jax.experimental import pallas as pl
from jax.experimental.pallas import tpu as pltpu


# ----------------------------------------------------------------------------
# Kernel: per (row-tile i, K-tile k) accumulate both aggregation paths into the
# resident f32 output block.  All scaling / projection work was hoisted.
# ----------------------------------------------------------------------------
def fbgcn_kernel(lap_ref,    # (tm, tk)  d ⊙ lap rows            (operand dtype)
                 ahat_ref,   # (tm, tk)  GCN-normalized adjacency (operand dtype)
                 ph_ref,     # (tk, Fp)  (aH*d) ⊙ relu(x W_high)  (operand dtype)
                 pc_ref,     # (tk, Fp)  x @ (aL*W_conv)          (operand dtype)
                 b_ref,      # (1,  Fp)  aL * conv bias           (f32)
                 out_ref):   # (tm, Fp)  f32 accumulator / output block
    k = pl.program_id(1)

    @pl.when(k == 0)
    def _init():
        # Fold the (already aL-scaled) GCN bias into the accumulator init.
        out_ref[...] = jnp.broadcast_to(b_ref[...], out_ref.shape)

    # Two accumulating dots (f32 accumulation on the MXU); no concat copies.
    acc = jnp.dot(ahat_ref[...], pc_ref[...], preferred_element_type=jnp.float32)
    acc = acc + jnp.dot(lap_ref[...], ph_ref[...],
                        preferred_element_type=jnp.float32)
    out_ref[...] += acc


# ----------------------------------------------------------------------------
# Wrapper: operand preparation (projection hoist, diagonal folding, lane
# padding, pre-cast) + tiling + pallas_call.
# ----------------------------------------------------------------------------
def fbgcn_layer_pallas(aL, aH, d_inv, lap, a_hat, x, w_high_t, w_conv_t, b_conv,
                       *, tm=512, tk=512, operand_dtype=jnp.bfloat16,
                       assume_diagonal_d_inv=True):
    N, _fin = x.shape
    fout = w_high_t.shape[1]
    fp = ((fout + 127) // 128) * 128           # lane-dense padded output width
    f32 = jnp.float32
    hp = jax.lax.Precision.HIGHEST

    # ---- tile selection -----------------------------------------------------
    tm = min(tm, N)
    tk = min(tk, N)
    # v7x shards the "parallel" row axis across its 2 TensorCores: keep >= 2
    # row tiles when the problem allows it.
    if N // tm < 2 and N >= 256 and (N // 2) % 8 == 0:
        tm = N // 2
    assert N % tm == 0 and N % tk == 0, "N must be divisible by the tile sizes"
    assert tm % 8 == 0 and (tk % 128 == 0 or tk == N), "tile/layout mismatch"

    aLs = jnp.asarray(aL, f32).reshape(())
    aHs = jnp.asarray(aH, f32).reshape(())

    # ---- fold the d_inv operator --------------------------------------------
    if assume_diagonal_d_inv:
        # d_inv is diagonal by construction in the module -> two cheap row
        # scalings replace the two dense N^3 matmuls.
        d = jnp.diagonal(d_inv).astype(f32)[:, None]        # (N, 1)
        lap_s = d * lap.astype(f32)                         # left d_inv
        ph_scale = aHs * d                                  # right d_inv (+ aH)
    else:
        # Dense fallback for a non-diagonal operator (exact, done once in XLA).
        lap_s = jnp.dot(jnp.dot(d_inv.astype(f32), lap.astype(f32), precision=hp),
                        d_inv.astype(f32), precision=hp)
        ph_scale = aHs

    # ---- hoisted feature projections (K = Fin, once, f32) --------------------
    p_h = ph_scale * jnp.maximum(
        jnp.dot(x.astype(f32), w_high_t.astype(f32), precision=hp), 0.0)
    p_c = jnp.dot(x.astype(f32), aLs * w_conv_t.astype(f32), precision=hp)

    # ---- lane padding + single pre-cast of the HBM-resident operands ---------
    od = jnp.dtype(operand_dtype)
    lap_s = lap_s.astype(od)
    ahat_s = a_hat.astype(od)
    p_h = jnp.zeros((N, fp), f32).at[:, :fout].set(p_h).astype(od)
    p_c = jnp.zeros((N, fp), f32).at[:, :fout].set(p_c).astype(od)
    b_pad = jnp.zeros((1, fp), f32).at[:, :fout].set(
        aLs * b_conv.reshape(1, fout).astype(f32))

    n_i, n_k = N // tm, N // tk
    opb = od.itemsize
    # Advisory hint: two (N,N)x(N,Fp) aggregations; lap_s/a_hat streamed once,
    # the projected features re-read per row tile.
    flops = 2 * 2 * N * N * fp
    bytes_accessed = (2 * N * N + 2 * n_i * N * fp) * opb + N * fp * 4

    out = pl.pallas_call(
        fbgcn_kernel,
        out_shape=jax.ShapeDtypeStruct((N, fp), jnp.float32),
        grid=(n_i, n_k),
        in_specs=[
            pl.BlockSpec((tm, tk), lambda i, k: (i, k)),   # d ⊙ lap tile
            pl.BlockSpec((tm, tk), lambda i, k: (i, k)),   # a_hat tile
            pl.BlockSpec((tk, fp), lambda i, k: (k, 0)),   # P_h tile
            pl.BlockSpec((tk, fp), lambda i, k: (k, 0)),   # P_c tile
            pl.BlockSpec((1, fp), lambda i, k: (0, 0)),    # aL * bias
        ],
        out_specs=pl.BlockSpec((tm, fp), lambda i, k: (i, 0)),
        compiler_params=pltpu.CompilerParams(
            dimension_semantics=("parallel", "arbitrary")),
        cost_estimate=pl.CostEstimate(
            flops=int(flops), transcendentals=0,
            bytes_accessed=int(bytes_accessed)),
    )(lap_s, ahat_s, p_h, p_c, b_pad)

    return out[:, :fout]


# ----------------------------------------------------------------------------
# Glue: edge_index -> dense GCN-normalized adjacency, mirroring PyG GCNConv
# semantics with edge_weight=None:  duplicate (non-self) edges sum, existing
# self loops are replaced/added as exactly one weight-1 self loop per node
# (add_remaining_self_loops with all-ones weights), then symmetric
# D^{-1/2}(A)D^{-1/2} with A[dst, src] convention.  Scatter stays in plain JAX.
# ----------------------------------------------------------------------------
def gcn_norm_dense(edge_index, num_nodes):
    src, dst = edge_index[0], edge_index[1]
    w = jnp.where(src == dst, 0.0, 1.0)                    # drop explicit self loops
    A = jnp.zeros((num_nodes, num_nodes), jnp.float32)
    A = A.at[dst, src].add(w)                              # duplicates sum
    A = A + jnp.eye(num_nodes, dtype=jnp.float32)          # one weight-1 loop/node
    deg = A.sum(axis=1)
    d_is = jnp.where(deg > 0, 1.0 / jnp.sqrt(deg), 0.0)
    return d_is[:, None] * A * d_is[None, :]


# ----------------------------------------------------------------------------
# Pure-JAX reference of the PyTorch forward (high-precision f32 matmuls).
# ----------------------------------------------------------------------------
def fbgcn_ref(aL, aH, d_inv, lap, a_hat, x, w_high_t, w_conv_t, b_conv):
    hp = jax.lax.Precision.HIGHEST
    mm = lambda a, b: jnp.dot(a, b, precision=hp)
    lhp = mm(mm(d_inv, lap), d_inv)
    hh = mm(lhp, jnp.maximum(mm(x, w_high_t), 0.0))
    hl = mm(a_hat, mm(x, w_conv_t)) + b_conv
    return aL[0] * hl + aH[0] * hh


if __name__ == "__main__":
    # Small, deterministic synthetic problem.
    N, E = 512, 2048
    in_dim, out_dim = 8, 32

    key = jax.random.PRNGKey(0)
    k_src, k_dst, k_x, k_wh, k_wc, k_a = jax.random.split(key, 6)

    # Graph
    src = jax.random.randint(k_src, (E,), 0, N)
    dst = jax.random.randint(k_dst, (E,), 0, N)
    edge_index = jnp.stack([src, dst]).astype(jnp.int32)

    # Dense graph operators passed to forward() in the PyTorch module.
    A_dense = jnp.zeros((N, N), jnp.float32).at[src, dst].set(1.0)
    A_sym = jnp.maximum(A_dense, A_dense.T)                 # undirected adjacency
    deg = A_sym.sum(axis=1)
    lap = jnp.diag(deg) - A_sym                             # graph Laplacian
    d_inv = jnp.diag(jnp.where(deg > 0, 1.0 / deg, 0.0))    # inverse-degree diagonal

    # Node features
    x = jax.random.normal(k_x, (N, in_dim), dtype=jnp.float32)

    # Parameters (deterministic init mirroring the module shapes).
    gain = jnp.sqrt(2.0)
    std_h = gain * jnp.sqrt(2.0 / (in_dim + out_dim))
    w_high_t = std_h * jax.random.normal(k_wh, (in_dim, out_dim), jnp.float32)
    lim = jnp.sqrt(6.0 / (in_dim + out_dim))
    w_conv_t = jax.random.uniform(k_wc, (in_dim, out_dim), jnp.float32,
                                  minval=-lim, maxval=lim)
    b_conv = jnp.zeros((1, out_dim), jnp.float32)
    aLaH = jax.random.uniform(k_a, (2,), jnp.float32)
    aL, aH = aLaH[:1], aLaH[1:]

    # GCN-normalized adjacency (message-passing glue for GCNConv).
    a_hat = gcn_norm_dense(edge_index, N)

    ref = fbgcn_ref(aL, aH, d_inv, lap, a_hat, x, w_high_t, w_conv_t, b_conv)

    # f32 MXU operands: tighter check.
    out_f32 = fbgcn_layer_pallas(aL, aH, d_inv, lap, a_hat, x,
                                 w_high_t, w_conv_t, b_conv,
                                 operand_dtype=jnp.float32)
    out_f32 = jax.block_until_ready(out_f32)
    assert out_f32.shape == (N, out_dim)
    assert jnp.allclose(out_f32, ref, atol=5e-2, rtol=5e-2), (
        "f32 path max err %.4g" % float(jnp.max(jnp.abs(out_f32 - ref))))

    # bf16 MXU operands (default fast path): looser check vs the f32 reference.
    out_bf16 = fbgcn_layer_pallas(aL, aH, d_inv, lap, a_hat, x,
                                  w_high_t, w_conv_t, b_conv,
                                  operand_dtype=jnp.bfloat16)
    out_bf16 = jax.block_until_ready(out_bf16)
    assert out_bf16.shape == (N, out_dim)
    assert jnp.allclose(out_bf16, ref, atol=1e-1, rtol=1e-1), (
        "bf16 path max err %.4g" % float(jnp.max(jnp.abs(out_bf16 - ref))))

    # Dense (non-diagonal-assumption) fallback path for d_inv.
    out_dense = fbgcn_layer_pallas(aL, aH, d_inv, lap, a_hat, x,
                                   w_high_t, w_conv_t, b_conv,
                                   operand_dtype=jnp.float32,
                                   assume_diagonal_d_inv=False)
    out_dense = jax.block_until_ready(out_dense)
    assert jnp.allclose(out_dense, ref, atol=5e-2, rtol=5e-2), (
        "dense-fallback max err %.4g" % float(jnp.max(jnp.abs(out_dense - ref))))

    print("KERNEL_OK")
</pallas_src>

<mosaic_0001>
module attributes {stable_mosaic.version = 11 : i64} {
  func.func @fbgcn_kernel(%arg0: i32, %arg1: i32, %arg2: memref<256x512xf32, #tpu.memory_space<vmem>>, %arg3: memref<256x512xf32, #tpu.memory_space<vmem>>, %arg4: memref<512x128xf32, #tpu.memory_space<vmem>>, %arg5: memref<512x128xf32, #tpu.memory_space<vmem>>, %arg6: memref<1x128xf32, #tpu.memory_space<vmem>>, %arg7: memref<256x128xf32, #tpu.memory_space<vmem>>) attributes {dimension_semantics = [#tpu.dimension_semantics<parallel>, #tpu.dimension_semantics<arbitrary>], iteration_bounds = array<i64: 2, 1>, scalar_prefetch = 0 : i64, scratch_operands = 0 : i64, tpu.core_type = #tpu.core_type<tc>, window_params = [{transform_indices = @transform_0, window_bounds = array<i64: 256, 512>}, {transform_indices = @transform_1, window_bounds = array<i64: 256, 512>}, {transform_indices = @transform_2, window_bounds = array<i64: 512, 128>}, {transform_indices = @transform_3, window_bounds = array<i64: 512, 128>}, {pipeline_mode = #tpu.pipeline_mode<synchronous>, transform_indices = @transform_4, window_bounds = array<i64: 1, 128>}, {transform_indices = @transform_5, window_bounds = array<i64: 256, 128>}]} {
    %c0_i32 = arith.constant 0 : i32
    %0 = arith.cmpi eq, %arg1, %c0_i32 : i32
    %1 = arith.extui %0 : i1 to i32
    %c0_i32_0 = arith.constant 0 : i32
    %2 = arith.cmpi ne, %1, %c0_i32_0 : i32
    scf.if %2 {
      %c0_13 = arith.constant 0 : index
      %c0_14 = arith.constant 0 : index
      %13 = vector.load %arg6[%c0_13, %c0_14] : memref<1x128xf32, #tpu.memory_space<vmem>>, vector<1x128xf32>
      %14 = vector.shape_cast %13 : vector<1x128xf32> to vector<1x128xf32>
      %15 = vector.broadcast %14 : vector<1x128xf32> to vector<256x128xf32>
      %c0_15 = arith.constant 0 : index
      %c0_16 = arith.constant 0 : index
      %16 = vector.load %arg7[%c0_15, %c0_16] : memref<256x128xf32, #tpu.memory_space<vmem>>, vector<256x128xf32>
      tpu.vector_store %arg7[%c0_15, %c0_16], %15 {strides = array<i32>} : memref<256x128xf32, #tpu.memory_space<vmem>>, vector<256x128xf32>,
    } else {
    }
    %c0 = arith.constant 0 : index
    %c0_1 = arith.constant 0 : index
    %3 = vector.load %arg3[%c0, %c0_1] : memref<256x512xf32, #tpu.memory_space<vmem>>, vector<256x512xf32>
    %c0_2 = arith.constant 0 : index
    %c0_3 = arith.constant 0 : index
    %4 = vector.load %arg5[%c0_2, %c0_3] : memref<512x128xf32, #tpu.memory_space<vmem>>, vector<512x128xf32>
    %cst = arith.constant dense<0.000000e+00> : vector<256x128xf32>
    %5 = tpu.matmul %3, %4, %cst {dimension_numbers = #tpu.dot_dimension_numbers<[1], [0], [0], [1], [0, 0, 1, 1], [], []>} : vector<256x512xf32>, vector<512x128xf32>, vector<256x128xf32> -> vector<256x128xf32>
    %c0_4 = arith.constant 0 : index
    %c0_5 = arith.constant 0 : index
    %6 = vector.load %arg2[%c0_4, %c0_5] : memref<256x512xf32, #tpu.memory_space<vmem>>, vector<256x512xf32>
    %c0_6 = arith.constant 0 : index
    %c0_7 = arith.constant 0 : index
    %7 = vector.load %arg4[%c0_6, %c0_7] : memref<512x128xf32, #tpu.memory_space<vmem>>, vector<512x128xf32>
    %cst_8 = arith.constant dense<0.000000e+00> : vector<256x128xf32>
    %8 = tpu.matmul %6, %7, %cst_8 {dimension_numbers = #tpu.dot_dimension_numbers<[1], [0], [0], [1], [0, 0, 1, 1], [], []>} : vector<256x512xf32>, vector<512x128xf32>, vector<256x128xf32> -> vector<256x128xf32>
    %9 = arith.addf %5, %8 : vector<256x128xf32>
    %c0_9 = arith.constant 0 : index
    %c0_10 = arith.constant 0 : index
    %10 = vector.load %arg7[%c0_9, %c0_10] : memref<256x128xf32, #tpu.memory_space<vmem>>, vector<256x128xf32>
    %11 = arith.addf %10, %9 : vector<256x128xf32>
    %c0_11 = arith.constant 0 : index
    %c0_12 = arith.constant 0 : index
    %12 = vector.load %arg7[%c0_11, %c0_12] : memref<256x128xf32, #tpu.memory_space<vmem>>, vector<256x128xf32>
    tpu.vector_store %arg7[%c0_11, %c0_12], %11 {strides = array<i32>} : memref<256x128xf32, #tpu.memory_space<vmem>>, vector<256x128xf32>,
    return
  }
  func.func @transform_0(%arg0: i32, %arg1: i32) -> (i32, i32) {
    %c0_i32 = arith.constant 0 : i32
    return %arg0, %arg1 : i32, i32
  }
  func.func @transform_1(%arg0: i32, %arg1: i32) -> (i32, i32) {
    %c0_i32 = arith.constant 0 : i32
    return %arg0, %arg1 : i32, i32
  }
  func.func @transform_2(%arg0: i32, %arg1: i32) -> (i32, i32) {
    %c0_i32 = arith.constant 0 : i32
    %c0_i32_0 = arith.constant 0 : i32
    return %arg1, %c0_i32 : i32, i32
  }
  func.func @transform_3(%arg0: i32, %arg1: i32) -> (i32, i32) {
    %c0_i32 = arith.constant 0 : i32
    %c0_i32_0 = arith.constant 0 : i32
    return %arg1, %c0_i32 : i32, i32
  }
  func.func @transform_4(%arg0: i32, %arg1: i32) -> (i32, i32) {
    %c0_i32 = arith.constant 0 : i32
    %c0_i32_0 = arith.constant 0 : i32
    %c0_i32_1 = arith.constant 0 : i32
    return %c0_i32, %c0_i32_0 : i32, i32
  }
  func.func @transform_5(%arg0: i32, %arg1: i32) -> (i32, i32) {
    %c0_i32 = arith.constant 0 : i32
    %c0_i32_0 = arith.constant 0 : i32
    return %arg0, %c0_i32 : i32, i32
  }
}

</mosaic_0001>

<bundles_post_ra>
// kernel: tpu_custom_call.1
= control target key start
LH: loop header
LB: loop body
LE: loop exit
PB: predicated region body
PF: predicated region fallthrough
CT: control target
= control target key end

     0   :  { %s3300_s0 = inlined_call_operand.hbm [shape: f32[512,512], index: 0, kind: input, shape index: {}]   ;;  %s3301_s1 = inlined_call_operand.hbm [shape: f32[512,512], index: 1, kind: input, shape index: {}]   ;;  %s3302_s2 = inlined_call_operand.hbm [shape: f32[512,128], index: 2, kind: input, shape index: {}]   ;;  %s3303_s3 = inlined_call_operand.hbm [shape: f32[512,128], index: 3, kind: input, shape index: {}]   ;;  %s3304_s4 = inlined_call_operand.vmem [shape: f32[1,128], index: 4, kind: input, shape index: {}]   ;;  %s3305_s5 = inlined_call_operand.hbm [shape: f32[512,128], index: 5, kind: output, shape index: {}]  }
   0x1   :  { %3311 = sst [smem:[#allocation17_spill]] %s3300_s0 }
   0x2   :  { %3312 = sst [smem:[#allocation18_spill]] %s3302_s2 }
   0x3   :  { %3313 = sst [smem:[#allocation19_spill]] %s3303_s3 }
   0x4   :  { %10 = vsyncpa [#allocation3], 0 }
   0x5   :  { %12 = vsyncpa [#allocation3 + $0x1], 0 }
   0x6   :  { %13 = vsyncpa [#allocation6], 0 }
   0x7   :  { %15 = vsyncpa [#allocation6 + $0x1], 0 }
   0x8   :  { %16 = vsyncpa [#allocation9], 0 }
   0x9   :  { %17 = vsyncpa [#allocation4], 0 }
   0xa   :  { %19 = vsyncpa [#allocation4 + $0x1], 0  ;;  %s2499_s18 = smov 0   ;;  %s2501_s19 = smov 0  }
   0xb   :  { %s2503_s20 = smov 0   ;;  %s2505_s21 = smov 0  }
   0xc   :  { %s2507_s22 = smov 0   ;;  %s2509_s23 = smov 0  }
   0xd LB: > { %s2530_s24 = sadd.s32 4294967295, %s2455_s23   ;;  %s1928_s25 = sadd.s32 4294967294, %s2455_s23   ;;  %s2455_s23 = sphi %s2509_s23, %s25_s23   ;;  %s2451_s22 = sphi %s2507_s22, %s3339_s22   ;;  %s2447_s21 = sphi %s2505_s21, %s3338_s21   ;;  %s2443_s20 = sphi %s2503_s20, %s3337_s20   ;;  %s2439_s19 = sphi %s2501_s19, %s3336_s19   ;;  %s2435_s18 = sphi %s2499_s18, %s3335_s18  }
   0xe   : > { %p59_p0 = scmp.ne.s32.totalorder %s2439_s19, %s2435_s18  ;;  %p3306_p1 = scmp.eq.s32.totalorder %s2530_s24, 0 }
   0xf   : > { %p190_p3 = scmp.eq.s32.totalorder %s1928_s25, 1  ;;  %p1929_p5 = scmp.ge.s32.totalorder %s2455_s23, 1 }
  0x10   : > { %p2539_p4 = por %p3306_p1, %p59_p0  ;;  %p197_p7 = scmp.lt.s32.totalorder %s2455_s23, 3 }
  0x11   : > { %p2544_p6 = por %p190_p3, %p59_p0  ;;  %s2457_s29 = smov [#allocation7]  }
  0x12   : > { %s3314_s26 = scalar_select %p2539_p4, 1, 0 }
  0x13   : > { %s3315_s27 = scalar_select %p2544_p6, 1, 0 }
  0x14   : > { %p2549_p8 = pnand %p1929_p5, %p197_p7  ;;  %s212_s30 = sshll.u32 %s2457_s29, 4  ;;  %s2553_s30 = int_to_ptr.vmem [resolvable:$true] %s212_s30 }
  0x15   : > { %s2458_s7 = smov [#allocation8]   ;;  %s3318_s2 = sld [smem:[#allocation18_spill]] }
  0x16   : > { %p2164_p9 = pneg %p2549_p8  ;;  %s228_s8 = sshll.u32 %s2458_s7, 4  ;;  %s2564_s8 = int_to_ptr.vmem [resolvable:$true] %s228_s8 }
  0x18   : > { %p2560_p11 = pnand %p2164_p9, %p3306_p1 }
  0x1a   : > { %p2247_p13 = pneg %p2560_p11 }
  0x1b   : > { %s2245_s11 = scalar_lea.hbm %s3318_s2, 8192 }
  0x1c   : > { %p2246_p12 = scmp.ne.s32.totalorder %s3318_s2, %s2245_s11  ;;  %p2252_p5 = scmp.lt.u32.totalorder %s2245_s11, %s3318_s2 }
  0x1e   : > { %p2248_p0 = pnand %p2247_p13, %p2246_p12 }
  0x20   : > { %p2249_p3 = pneg %p2248_p0 }
  0x22   : > { %p2254_p7 = pnand %p2252_p5, %p2249_p3 }
  0x24   : > { %2257 = shalt.err (!%p2254_p7)
}
  0x25   : > { %s2258_s16 = scalar_lea.vmem %s2553_s30, 8192  ;;  %p2266_p2 = scmp.lt.s32.totalorder %s2553_s30, %s2553_s30 }
  0x26   : > { %p2259_p9 = scmp.ne.s32.totalorder %s2553_s30, %s2258_s16  ;;  %p2267_p12 = scmp.lt.s32.totalorder %s2258_s16, %s2258_s16 }
  0x28   : > { %p2261_p10 = pnand %p2259_p9, %p2247_p13  ;;  %p2268_p0 = por %p2267_p12, %p2266_p2 }
  0x2a   : > { %p2262_p1 = pneg %p2261_p10 }
  0x2c   : > { %p2269_p6 = pnand %p2268_p0, %p2262_p1 }
  0x2e   : > { %2272 = shalt.err (!%p2269_p6)
}
  0x2f   : > { %s2459_s17 = smov 128   ;;  %s2460_s25 = smov 8  }
  0x30   : > { %2167 = dma.hbm_to_vmem [thread:$0]  (!%p2560_p11), %s3318_s2, 8192, %s2553_s30, [#allocation6], %s2459_s17, %s2459_s17, %s2460_s25  }
  0x31   : > { %s3319_s3 = sld [smem:[#allocation19_spill]] }
  0x37   : > { %s2273_s11 = scalar_lea.hbm %s3319_s3, 8192 }
  0x38   : > { %p2274_p2 = scmp.ne.s32.totalorder %s3319_s3, %s2273_s11  ;;  %p2280_p10 = scmp.lt.u32.totalorder %s2273_s11, %s3319_s3 }
  0x3a   : > { %p2276_p1 = pnand %p2274_p2, %p2247_p13 }
  0x3c   : > { %p2277_p6 = pneg %p2276_p1 }
  0x3e   : > { %p2282_p3 = pnand %p2280_p10, %p2277_p6 }
  0x40   : > { %2285 = shalt.err (!%p2282_p3)
}
  0x41   : > { %s2286_s30 = scalar_lea.vmem %s2564_s8, 8192  ;;  %p2294_p12 = scmp.lt.s32.totalorder %s2564_s8, %s2564_s8 }
  0x42   : > { %p2287_p5 = scmp.ne.s32.totalorder %s2564_s8, %s2286_s30  ;;  %p2295_p0 = scmp.lt.s32.totalorder %s2286_s30, %s2286_s30 }
  0x44   : > { %p2289_p7 = pnand %p2287_p5, %p2247_p13  ;;  %p2296_p2 = por %p2295_p0, %p2294_p12 }
  0x46   : > { %p2290_p9 = pneg %p2289_p7 }
  0x48   : > { %p2297_p1 = pnand %p2296_p2, %p2290_p9 }
  0x4a   : > { %2300 = shalt.err (!%p2297_p1)
}
  0x4b   : > { %2170 = dma.hbm_to_vmem [thread:$0]  (!%p2560_p11), %s3319_s3, 8192, %s2564_s8, [#allocation9], %s2459_s17, %s2459_s17, %s2460_s25  }
  0x4c   : > { %s37_s7 = sadd.s32 1, %s2451_s22  ;;  %s46_s9 = sadd.s32 1, %s2443_s20 }
  0x4d   : > { %p39_p13 = scmp.ge.s32.totalorder %s37_s7, 2  ;;  %p53_p6 = scmp.ne.s32.totalorder %s2443_s20, %s2439_s19 }
  0x4e   : > { %p54_p10 = scmp.eq.s32.totalorder %s2455_s23, 0  ;;  %p2184_p3 = scmp.lt.s32.totalorder %s2455_s23, 2 }
  0x4f   : > { %s3341_s7 = smov (%p39_p13, %s37_s7), 0  ;;  %p3321_p7 = scmp.eq.s32.totalorder %s2530_s24, 1 }
  0x50   : > { %3320 = sst [smem:[#allocation16_spill]] %s3341_s7  ;;  %p55_p5 = por %p54_p10, %p53_p6 }
  0x51   : > { %p2628_p9 = por %p3321_p7, %p53_p6  ;;  %s41_s10 = ssub.s32 %s2451_s22, %s3341_s7 }
  0x52   : > { %s245_s11 = sand.u32 1, %s2443_s20   ;;  %p44_p11 = scmp.eq.s32.totalorder %s41_s10, 0 }
  0x53   : > { %s3322_s6 = scalar_select %p2628_p9, 1, 0 }
  0x54   : > { %s2635_s8 = sshll.u32 %s245_s11, 10  ;;  %s3307_s17 = sshll.u32 %s2451_s22, 14 }
  0x55   : > { %s2639_s25 = scalar_select %p44_p11, %s2443_s20, %s46_s9  }
  0x56   : > { %s3323_s0 = sld [smem:[#allocation17_spill]]  ;;  %s249_s15 = scalar_lea.vmem [#allocation2], %s2635_s8 }
  0x57   : > { %s259_s30 = sshll.u32 %s249_s15, 4  ;;  %p2651_p12 = pnand %p2184_p3, %p55_p5  ;;  %s2655_s30 = int_to_ptr.vmem [resolvable:$true] %s259_s30 }
  0x58   : > { %s2657_s29 = scalar_lea.sflag [#allocation3], %s245_s11 }
  0x59   : > { %p2303_p2 = pneg %p2651_p12 }
  0x5c   : > { %s2646_s14 = scalar_lea.hbm %s3323_s0, %s3307_s17  ;;  %s2306_s13 = scalar_lea.hbm %s3323_s0, 32768 }
  0x5d   : > { %s2301_s9 = scalar_lea.hbm %s2646_s14, 16384  ;;  %p2307_p6 = scmp.lt.u32.totalorder %s2646_s14, %s3323_s0 }
  0x5e   : > { %p2302_p0 = scmp.ne.s32.totalorder %s2646_s14, %s2301_s9  ;;  %p2308_p10 = scmp.lt.u32.totalorder %s2306_s13, %s2301_s9 }
  0x5f   : > { %p2310_p5 = scmp.lt.u32.totalorder %s2301_s9, %s2646_s14 }
  0x60   : > { %p2304_p1 = pnand %p2303_p2, %p2302_p0  ;;  %p2309_p3 = por %p2308_p10, %p2307_p6 }
  0x62   : > { %p2305_p13 = pneg %p2304_p1  ;;  %p2311_p7 = por %p2310_p5, %p2309_p3 }
  0x64   : > { %p2312_p11 = pnand %p2311_p7, %p2305_p13 }
  0x66   : > { %2315 = shalt.err (!%p2312_p11)
}
  0x67   : > { %s2316_s11 = scalar_lea.vmem %s2655_s30, 16384  ;;  %s2461_s10 = smov [#allocation2]  }
  0x68   : > { %p2317_p0 = scmp.ne.s32.totalorder %s2655_s30, %s2316_s11  ;;  %s2321_s12 = sshll.u32 %s2461_s10, 4  ;;  %s2322_s12 = int_to_ptr.vmem [resolvable:$false] %s2321_s12 }
  0x69   : > { %s2323_s17 = scalar_lea.vmem %s2322_s12, 32768  ;;  %p2324_p4 = scmp.lt.s32.totalorder %s2655_s30, %s2322_s12 }
  0x6a   : > { %p2319_p1 = pnand %p2317_p0, %p2303_p2  ;;  %p2325_p6 = scmp.lt.s32.totalorder %s2323_s17, %s2316_s11 }
  0x6c   : > { %p2320_p9 = pneg %p2319_p1  ;;  %p2326_p10 = por %p2325_p6, %p2324_p4 }
  0x6e   : > { %p2327_p3 = pnand %p2326_p10, %p2320_p9 }
  0x70   : > { %2330 = shalt.err (!%p2327_p3)
}
  0x71   : > { %s2462_s9 = smov 512   ;;  %s2463_s13 = smov 32  }
  0x72   : > { %2174 = dma.hbm_to_vmem [thread:$0]  (!%p2651_p12), %s2646_s14, 16384, %s2655_s30, %s2657_s29, %s2462_s9, %s2462_s9, %s2463_s13  }
  0x73   : > { %s3325_s15 = sshll.u32 %s2451_s22, 14  ;;  %s273_s17 = scalar_lea.vmem [#allocation5], %s2635_s8 }
  0x74   : > { %s2693_s12 = scalar_lea.hbm %s3301_s1, %s3325_s15  ;;  %s283_s0 = sshll.u32 %s273_s17, 4  ;;  %s2697_s0 = int_to_ptr.vmem [resolvable:$true] %s283_s0 }
  0x75   : > { %s269_s2 = sand.u32 1, %s2455_s23   ;;  %s2331_s7 = scalar_lea.hbm %s2693_s12, 16384 }
  0x76   : > { %s2699_s3 = scalar_lea.sflag [#allocation6], %s269_s2  ;;  %p2332_p4 = scmp.ne.s32.totalorder %s2693_s12, %s2331_s7 }
  0x77   : > { %s2336_s29 = scalar_lea.hbm %s3301_s1, 32768  ;;  %p2337_p5 = scmp.lt.u32.totalorder %s2693_s12, %s3301_s1 }
  0x78   : > { %p2334_p9 = pnand %p2332_p4, %p2303_p2  ;;  %p2338_p7 = scmp.lt.u32.totalorder %s2336_s29, %s2331_s7 }
  0x79   : > { %p2340_p0 = scmp.lt.u32.totalorder %s2331_s7, %s2693_s12 }
  0x7a   : > { %p2335_p13 = pneg %p2334_p9  ;;  %p2339_p11 = por %p2338_p7, %p2337_p5 }
  0x7c   : > { %p2341_p1 = por %p2340_p0, %p2339_p11 }
  0x7e   : > { %p2342_p6 = pnand %p2341_p1, %p2335_p13 }
  0x80   : > { %2345 = shalt.err (!%p2342_p6)
}
  0x81   : > { %s2346_s2 = scalar_lea.vmem %s2697_s0, 16384  ;;  %s2464_s8 = smov [#allocation5]  }
  0x82   : > { %p2347_p10 = scmp.ne.s32.totalorder %s2697_s0, %s2346_s2  ;;  %s2351_s10 = sshll.u32 %s2464_s8, 4  ;;  %s2352_s10 = int_to_ptr.vmem [resolvable:$false] %s2351_s10 }
  0x83   : > { %s2353_s17 = scalar_lea.vmem %s2352_s10, 32768  ;;  %p2354_p9 = scmp.lt.s32.totalorder %s2697_s0, %s2352_s10 }
  0x84   : > { %p2349_p3 = pnand %p2347_p10, %p2303_p2  ;;  %p2355_p5 = scmp.lt.s32.totalorder %s2353_s17, %s2346_s2 }
  0x86   : > { %p2350_p4 = pneg %p2349_p3  ;;  %p2356_p7 = por %p2355_p5, %p2354_p9 }
  0x88   : > { %p2357_p11 = pnand %p2356_p7, %p2350_p4 }
  0x8a   : > { %2360 = shalt.err (!%p2357_p11)
}
  0x8b   : > { %2177 = dma.hbm_to_vmem [thread:$0]  (!%p2651_p12), %s2693_s12, 16384, %s2697_s0, %s2699_s3, %s2462_s9, %s2462_s9, %s2463_s13  }
  0x8c   : > { %295 = sbr.rel (%p2549_p8) target bundleno = 708 (0x2c4), region = 40  ;;  %s2731_s7 = sand.u32 (!%p2549_p8), 1, %s2439_s19  }
  0x8d   : > { %s1942_s14 = sshll.u32 (!%p2549_p8), %s2731_s7, 10  ;;  %s298_s30 = scalar_lea.sflag (!%p2549_p8), [#allocation3], %s2731_s7 }
  0x8e   : > { %s2735_s29 = scalar_lea.vmem (!%p2549_p8), [#allocation2], %s1942_s14  ;;  %p3326_p2 = scmp.ne.s32.totalorder (!%p2549_p8), %s3314_s26, 0 }
  0x93   : > { %2414 = dma.done.wait (%p3326_p2), %s298_s30, 16384  }
  0x94   : > { %2416 = vsyncadd (%p3326_p2), %s298_s30, 4294950912  ;;  %s306_s0 = sand.u32 1, %s2530_s24   ;;  %s2742_s28 = scalar_lea.vmem [#allocation5], %s1942_s14 }
  0x95   : > { %s307_s3 = scalar_lea.sflag [#allocation6], %s306_s0 }
  0x96   : > { %2418 = dma.done.wait (%p3326_p2), %s307_s3, 16384  }
  0x97   : > { %2420 = vsyncadd (%p3326_p2), %s307_s3, 4294950912  ;;  %p3327_p8 = scmp.eq.s32.totalorder %s2530_s24, 0 }
  0x99   : > { %2422 = dma.done.wait (%p3327_p8), [#allocation6], 8192   ;;  %p3328_p12 = pmov %p3327_p8 }
  0x9a   : > { %p3329_p13 = pmov %p3327_p8 }
  0x9b   : > { %2424 = vsyncadd (%p3328_p12), [#allocation6], 4294959104 }
  0x9c   : > { %2426 = dma.done.wait (%p3329_p13), [#allocation9], 8192   ;;  %p3330_p0 = pmov %p3327_p8 }
  0x9d   : > { %v2465_v0 = vmov 0.0|0.0   ;;  %v720_v1 = vld [vmem:[#allocation7] sm:$0xff]  ;;  %v721_v2 = vld [vmem:[#allocation7 + $0x8] sm:$0xff]  ;;  %v722_v6 = vld [vmem:[#allocation7 + $0x10] sm:$0xff]  ;;  %s1946_s24 = sshll.u32 %s2731_s7, 8  ;;  %s1957_s13 = sshll.u32 %s2447_s21, 12 }
  0x9e   : > { %2428 = vsyncadd (%p3330_p0), [#allocation9], 4294959104  ;;  %1958 = vmatprep.subr.bf16.mxu0 %v2465_v0  ;;  %2006 = vmatprep.subr.bf16.mxu1 %v2465_v0  ;;  %v752_v3 = vld [vmem:[#allocation7 + $0x100] sm:$0xff]  ;;  %v1959_v4 = vpack.c.bf16 %v721_v2, %v720_v1  ;;  %v753_v5 = vld [vmem:[#allocation7 + $0x108] sm:$0xff]  ;;  %s3149_s9 = scalar_lea.vmem [#allocation10], %s1946_s24  ;;  %s3247_s2 = scalar_lea.hbm %s3305_s5, %s1957_s13 }
  0x9f   : > { %v723_v7 = vld [vmem:[#allocation7 + $0x18] sm:$0xff]  ;;  %v2007_v8 = vpack.c.bf16 %v753_v5, %v752_v3  ;;  %v754_v9 = vld [vmem:[#allocation7 + $0x110] sm:$0xff]  ;;  %v724_v13 = vld [vmem:[#allocation7 + $0x20] sm:$0xff]  ;;  %s1794_s12 = sshll.u32 %s3149_s9, 4  ;;  %s1781_s8 = scalar_lea.sflag [#allocation4], %s2731_s7  ;;  %s3249_s12 = int_to_ptr.vmem [resolvable:$true] %s1794_s12 }
  0xa0   : > { %v755_v10 = vld [vmem:[#allocation7 + $0x118] sm:$0xff]  ;;  %1960 = vmatpush1.bf16.msra.mxu0 %v1959_v4  ;;  %v1962_v11 = vpack.c.bf16 %v723_v7, %v722_v6  ;;  %v725_v14 = vld [vmem:[#allocation7 + $0x28] sm:$0xff]  ;;  %v756_v15 = vld [vmem:[#allocation7 + $0x120] sm:$0xff]  ;;  %s2361_s10 = scalar_lea.vmem %s3249_s12, 4096  ;;  %p3331_p6 = scmp.ne.s32.totalorder %s3322_s6, 0 }
  0xa1   : > { %2008 = vmatpush1.bf16.msra.mxu1 %v2007_v8  ;;  %1961 = vmatprep.subr.bf16.mxu0 %v2465_v0  ;;  %v2010_v12 = vpack.c.bf16 %v755_v10, %v754_v9  ;;  %v757_v16 = vld [vmem:[#allocation7 + $0x128] sm:$0xff]  ;;  %v1965_v17 = vpack.c.bf16 %v725_v14, %v724_v13  ;;  %v726_v19 = vld [vmem:[#allocation7 + $0x30] sm:$0xff]  ;;  %v727_v20 = vld [vmem:[#allocation7 + $0x38] sm:$0xff]  ;;  %p2362_p1 = scmp.ne.s32.totalorder %s3249_s12, %s2361_s10  ;;  %s2466_s21 = smov [#allocation10]  }
  0xa2   : > { %2009 = vmatprep.subr.bf16.mxu1 %v2465_v0  ;;  %v2013_v18 = vpack.c.bf16 %v757_v16, %v756_v15  ;;  %v758_v21 = vld [vmem:[#allocation7 + $0x130] sm:$0xff]  ;;  %v759_v22 = vld [vmem:[#allocation7 + $0x138] sm:$0xff]  ;;  %v1968_v23 = vpack.c.bf16 %v727_v20, %v726_v19  ;;  %v728_v25 = vld [vmem:[#allocation7 + $0x40] sm:$0xff]  ;;  %s2365_s17 = sshll.u32 %s2466_s21, 4  ;;  %s2366_s17 = int_to_ptr.vmem [resolvable:$false] %s2365_s17 }
  0xa3   : > { %v2016_v24 = vpack.c.bf16 %v759_v22, %v758_v21  ;;  %v729_v26 = vld [vmem:[#allocation7 + $0x48] sm:$0xff]  ;;  %v760_v27 = vld [vmem:[#allocation7 + $0x140] sm:$0xff]  ;;  %v730_v31 = vld [vmem:[#allocation7 + $0x50] sm:$0xff]  ;;  %p2363_p10 = pnand %p2362_p1, %p3331_p6  ;;  %s2367_s14 = scalar_lea.vmem %s2366_s17, 8192 }
  0xa4   : > { %1963 = vmatpush1.bf16.msra.mxu0 %v1962_v11  ;;  %v761_v28 = vld [vmem:[#allocation7 + $0x148] sm:$0xff]  ;;  %v1971_v29 = vpack.c.bf16 %v729_v26, %v728_v25  ;;  %v731_v32 = vld [vmem:[#allocation7 + $0x58] sm:$0xff]  ;;  %v762_v33 = vld [vmem:[#allocation7 + $0x150] sm:$0xff]  ;;  %p2368_p4 = scmp.lt.s32.totalorder %s3249_s12, %s2366_s17  ;;  %p2369_p9 = scmp.lt.s32.totalorder %s2367_s14, %s2361_s10 }
  0xa5   : > { %2011 = vmatpush1.bf16.msra.mxu1 %v2010_v12  ;;  %1964 = vmatprep.subr.bf16.mxu0 %v2465_v0  ;;  %v2019_v30 = vpack.c.bf16 %v761_v28, %v760_v27  ;;  %v763_v34 = vld [vmem:[#allocation7 + $0x158] sm:$0xff]  ;;  %v1974_v35 = vpack.c.bf16 %v731_v32, %v730_v31  ;;  %v732_v37 = vld [vmem:[#allocation7 + $0x60] sm:$0xff]  ;;  %v733_v38 = vld [vmem:[#allocation7 + $0x68] sm:$0xff]  ;;  %p2364_p3 = pneg %p2363_p10 }
  0xa6   : > { %2012 = vmatprep.subr.bf16.mxu1 %v2465_v0  ;;  %v2022_v36 = vpack.c.bf16 %v763_v34, %v762_v33  ;;  %v764_v39 = vld [vmem:[#allocation7 + $0x160] sm:$0xff]  ;;  %v765_v40 = vld [vmem:[#allocation7 + $0x168] sm:$0xff]  ;;  %v595_v42 = vld [vmem:[%s2735_s29 + $0x18] sm:$0xff]  ;;  %v1977_v43 = vpack.c.bf16 %v733_v38, %v732_v37  ;;  %p2370_p5 = por %p2369_p9, %p2368_p4 }
  0xa7   : > { %v593_v41 = vld [vmem:[%s2735_s29 + $0x8] sm:$0xff]  ;;  %1073 = vmatprep.mubr.f32.mxu1 %v595_v42  ;;  %v2025_v44 = vpack.c.bf16 %v765_v40, %v764_v39  ;;  %v734_v45 = vld [vmem:[#allocation7 + $0x70] sm:$0xff]  ;;  %v735_v46 = vld [vmem:[#allocation7 + $0x78] sm:$0xff] }
  0xa8   : > { %1966 = vmatpush1.bf16.msra.mxu0 %v1965_v17  ;;  %848 = vmatprep.mubr.f32.mxu0 %v593_v41  ;;  %v766_v47 = vld [vmem:[#allocation7 + $0x170] sm:$0xff]  ;;  %v767_v48 = vld [vmem:[#allocation7 + $0x178] sm:$0xff]  ;;  %v1980_v49 = vpack.c.bf16 %v735_v46, %v734_v45  ;;  %v736_v51 = vld [vmem:[#allocation7 + $0x80] sm:$0xff]  ;;  %p2371_p7 = pnand %p2370_p5, %p2364_p3 }
  0xa9   : > { %2014 = vmatpush1.bf16.msra.mxu1 %v2013_v18  ;;  %1967 = vmatprep.subr.bf16.mxu0 %v2465_v0  ;;  %v2028_v50 = vpack.c.bf16 %v767_v48, %v766_v47  ;;  %v737_v52 = vld [vmem:[#allocation7 + $0x88] sm:$0xff]  ;;  %v768_v53 = vld [vmem:[#allocation7 + $0x180] sm:$0xff]  ;;  %v738_v57 = vld [vmem:[#allocation7 + $0x90] sm:$0xff] }
  0xaa   : > { %2015 = vmatprep.subr.bf16.mxu1 %v2465_v0  ;;  %v769_v54 = vld [vmem:[#allocation7 + $0x188] sm:$0xff]  ;;  %v1983_v55 = vpack.c.bf16 %v737_v52, %v736_v51  ;;  %v739_v58 = vld [vmem:[#allocation7 + $0x98] sm:$0xff]  ;;  %v770_v59 = vld [vmem:[#allocation7 + $0x190] sm:$0xff] }
  0xab   : > { %v2031_v56 = vpack.c.bf16 %v769_v54, %v768_v53  ;;  %v771_v60 = vld [vmem:[#allocation7 + $0x198] sm:$0xff]  ;;  %v1986_v61 = vpack.c.bf16 %v739_v58, %v738_v57  ;;  %v740_v63 = vld [vmem:[#allocation7 + $0xa0] sm:$0xff]  ;;  %v741_v1 = vld [vmem:[#allocation7 + $0xa8] sm:$0xff] }
  0xac   : > { %1969 = vmatpush1.bf16.msra.mxu0 %v1968_v23  ;;  %v2034_v62 = vpack.c.bf16 %v771_v60, %v770_v59  ;;  %v772_v2 = vld [vmem:[#allocation7 + $0x1a0] sm:$0xff]  ;;  %v773_v3 = vld [vmem:[#allocation7 + $0x1a8] sm:$0xff]  ;;  %v1989_v4 = vpack.c.bf16 %v741_v1, %v740_v63  ;;  %v742_v6 = vld [vmem:[#allocation7 + $0xb0] sm:$0xff] }
  0xad   : > { %2017 = vmatpush1.bf16.msra.mxu1 %v2016_v24  ;;  %1970 = vmatprep.subr.bf16.mxu0 %v2465_v0  ;;  %v2037_v5 = vpack.c.bf16 %v773_v3, %v772_v2  ;;  %v743_v7 = vld [vmem:[#allocation7 + $0xb8] sm:$0xff]  ;;  %v774_v8 = vld [vmem:[#allocation7 + $0x1b0] sm:$0xff]  ;;  %v744_v12 = vld [vmem:[#allocation7 + $0xc0] sm:$0xff] }
  0xae   : > { %2018 = vmatprep.subr.bf16.mxu1 %v2465_v0  ;;  %v775_v9 = vld [vmem:[#allocation7 + $0x1b8] sm:$0xff]  ;;  %v1992_v10 = vpack.c.bf16 %v743_v7, %v742_v6  ;;  %v745_v13 = vld [vmem:[#allocation7 + $0xc8] sm:$0xff]  ;;  %v776_v14 = vld [vmem:[#allocation7 + $0x1c0] sm:$0xff] }
  0xaf   : > { %v2040_v11 = vpack.c.bf16 %v775_v9, %v774_v8  ;;  %v777_v15 = vld [vmem:[#allocation7 + $0x1c8] sm:$0xff]  ;;  %v1995_v16 = vpack.c.bf16 %v745_v13, %v744_v12  ;;  %v746_v18 = vld [vmem:[#allocation7 + $0xd0] sm:$0xff]  ;;  %v747_v19 = vld [vmem:[#allocation7 + $0xd8] sm:$0xff] }
  0xb0   : > { %1972 = vmatpush1.bf16.msra.mxu0 %v1971_v29  ;;  %v2043_v17 = vpack.c.bf16 %v777_v15, %v776_v14  ;;  %v778_v20 = vld [vmem:[#allocation7 + $0x1d0] sm:$0xff]  ;;  %v779_v21 = vld [vmem:[#allocation7 + $0x1d8] sm:$0xff]  ;;  %v1998_v22 = vpack.c.bf16 %v747_v19, %v746_v18  ;;  %v748_v24 = vld [vmem:[#allocation7 + $0xe0] sm:$0xff] }
  0xb1   : > { %2020 = vmatpush1.bf16.msra.mxu1 %v2019_v30  ;;  %1973 = vmatprep.subr.bf16.mxu0 %v2465_v0  ;;  %v2046_v23 = vpack.c.bf16 %v779_v21, %v778_v20  ;;  %v749_v25 = vld [vmem:[#allocation7 + $0xe8] sm:$0xff]  ;;  %v780_v26 = vld [vmem:[#allocation7 + $0x1e0] sm:$0xff]  ;;  %v750_v30 = vld [vmem:[#allocation7 + $0xf0] sm:$0xff] }
  0xb2   : > { %2021 = vmatprep.subr.bf16.mxu1 %v2465_v0  ;;  %v781_v27 = vld [vmem:[#allocation7 + $0x1e8] sm:$0xff]  ;;  %v2001_v28 = vpack.c.bf16 %v749_v25, %v748_v24  ;;  %v751_v31 = vld [vmem:[#allocation7 + $0xf8] sm:$0xff]  ;;  %v782_v32 = vld [vmem:[#allocation7 + $0x1f0] sm:$0xff] }
  0xb3   : > { %v2049_v29 = vpack.c.bf16 %v781_v27, %v780_v26  ;;  %v783_v33 = vld [vmem:[#allocation7 + $0x1f8] sm:$0xff]  ;;  %v2004_v34 = vpack.c.bf16 %v751_v31, %v750_v30  ;;  %v529_v37 = vld [vmem:[#allocation8 + $0x8] sm:$0xff]  ;;  %v560_v38 = vld [vmem:[#allocation8 + $0x100] sm:$0xff] }
  0xb4   : > { %1975 = vmatpush1.bf16.msra.mxu0 %v1974_v35  ;;  %v2052_v35 = vpack.c.bf16 %v783_v33, %v782_v32  ;;  %v561_v39 = vld [vmem:[#allocation8 + $0x108] sm:$0xff]  ;;  %v592_v40 = vld [vmem:[%s2735_s29] sm:$0xff]  ;;  %v594_v42 = vld [vmem:[%s2735_s29 + $0x10] sm:$0xff] }
  0xb5   : > { %2023 = vmatpush1.bf16.msra.mxu1 %v2022_v36  ;;  %1976 = vmatprep.subr.bf16.mxu0 %v2465_v0  ;;  %v528_v36 = vld [vmem:[#allocation8] sm:$0xff]  ;;  %v530_v45 = vld [vmem:[#allocation8 + $0x10] sm:$0xff]  ;;  %v531_v46 = vld [vmem:[#allocation8 + $0x18] sm:$0xff] }
  0xb6   : > { %2024 = vmatprep.subr.bf16.mxu1 %v2465_v0  ;;  %v2055_v41 = vpack.c.bf16 %v529_v37, %v528_v36  ;;  %v599_v47 = vld [vmem:[%s2735_s29 + $0x38] sm:$0xff]  ;;  %v562_v48 = vld [vmem:[#allocation8 + $0x110] sm:$0xff]  ;;  %v601_v52 = vld [vmem:[%s2735_s29 + $0x48] sm:$0xff]  ;;  %v2058_v53 = vpack.c.bf16 %v531_v46, %v530_v45 }
  0xb7   : > { %v598_v51 = vld [vmem:[%s2735_s29 + $0x30] sm:$0xff]  ;;  %v603_v54 = vld [vmem:[%s2735_s29 + $0x58] sm:$0xff]  ;;  %v533_v57 = vld [vmem:[#allocation8 + $0x28] sm:$0xff] }
  0xb8   : > { %1978 = vmatpush1.bf16.msra.mxu0 %v1977_v43  ;;  %v2103_v43 = vpack.c.bf16 %v561_v39, %v560_v38  ;;  %v564_v58 = vld [vmem:[#allocation8 + $0x120] sm:$0xff]  ;;  %v565_v59 = vld [vmem:[#allocation8 + $0x128] sm:$0xff]  ;;  %v607_v1 = vld [vmem:[%s2735_s29 + $0x78] sm:$0xff] }
  0xb9   : > { %2026 = vmatpush1.bf16.msra.mxu1 %v2025_v44  ;;  %1979 = vmatprep.subr.bf16.mxu0 %v2465_v0  ;;  %v597_v44 = vld [vmem:[%s2735_s29 + $0x28] sm:$0xff]  ;;  %v600_v60 = vld [vmem:[%s2735_s29 + $0x40] sm:$0xff]  ;;  %v2109_v2 = vpack.c.bf16 %v565_v59, %v564_v58  ;;  %v534_v3 = vld [vmem:[#allocation8 + $0x30] sm:$0xff] }
  0xba   : > { %2027 = vmatprep.subr.bf16.mxu1 %v2465_v0  ;;  %v567_v6 = vld [vmem:[#allocation8 + $0x138] sm:$0xff]  ;;  %v604_v7 = vld [vmem:[%s2735_s29 + $0x60] sm:$0xff]  ;;  %v606_v8 = vld [vmem:[%s2735_s29 + $0x70] sm:$0xff] }
  0xbb   : > { %v609_v9 = vld [vmem:[%s2735_s29 + $0x88] sm:$0xff]  ;;  %v536_v13 = vld [vmem:[#allocation8 + $0x40] sm:$0xff]  ;;  %v610_v18 = vld [vmem:[%s2735_s29 + $0x90] sm:$0xff] }
  0xbc   : > { %1981 = vmatpush1.bf16.msra.mxu0 %v1980_v49  ;;  %v563_v49 = vld [vmem:[#allocation8 + $0x118] sm:$0xff]  ;;  %v537_v14 = vld [vmem:[#allocation8 + $0x48] sm:$0xff]  ;;  %v568_v15 = vld [vmem:[#allocation8 + $0x140] sm:$0xff] }
  0xbd   : > { %2029 = vmatpush1.bf16.msra.mxu1 %v2028_v50  ;;  %1982 = vmatprep.subr.bf16.mxu0 %v2465_v0  ;;  %v596_v50 = vld [vmem:[%s2735_s29 + $0x20] sm:$0xff]  ;;  %v613_v19 = vld [vmem:[%s2735_s29 + $0xa8] sm:$0xff]  ;;  %v2067_v20 = vpack.c.bf16 %v537_v14, %v536_v13  ;;  %v615_v21 = vld [vmem:[%s2735_s29 + $0xb8] sm:$0xff] }
  0xbe   : > { %2030 = vmatprep.subr.bf16.mxu1 %v2465_v0  ;;  %v539_v24 = vld [vmem:[#allocation8 + $0x58] sm:$0xff]  ;;  %v570_v25 = vld [vmem:[#allocation8 + $0x150] sm:$0xff]  ;;  %v612_v27 = vld [vmem:[%s2735_s29 + $0xa0] sm:$0xff] }
  0xbf   : > { %v571_v26 = vld [vmem:[#allocation8 + $0x158] sm:$0xff]  ;;  %v540_v33 = vld [vmem:[#allocation8 + $0x60] sm:$0xff]  ;;  %v573_v36 = vld [vmem:[#allocation8 + $0x168] sm:$0xff] }
  0xc0   : > { %1984 = vmatpush1.bf16.msra.mxu0 %v1983_v55  ;;  %v2106_v55 = vpack.c.bf16 %v563_v49, %v562_v48  ;;  %v619_v31 = vld [vmem:[%s2735_s29 + $0xd8] sm:$0xff]  ;;  %v2118_v32 = vpack.c.bf16 %v571_v26, %v570_v25  ;;  %v616_v37 = vld [vmem:[%s2735_s29 + $0xc0] sm:$0xff]  ;;  %v618_v38 = vld [vmem:[%s2735_s29 + $0xd0] sm:$0xff] }
  0xc1   : > { %2032 = vmatpush1.bf16.msra.mxu1 %v2031_v56  ;;  %1985 = vmatprep.subr.bf16.mxu0 %v2465_v0  ;;  %v532_v56 = vld [vmem:[#allocation8 + $0x20] sm:$0xff]  ;;  %v621_v39 = vld [vmem:[%s2735_s29 + $0xe8] sm:$0xff]  ;;  %v574_v45 = vld [vmem:[#allocation8 + $0x170] sm:$0xff] }
  0xc2   : > { %2033 = vmatprep.subr.bf16.mxu1 %v2465_v0  ;;  %v2061_v63 = vpack.c.bf16 %v533_v57, %v532_v56  ;;  %v575_v46 = vld [vmem:[#allocation8 + $0x178] sm:$0xff]  ;;  %v622_v48 = vld [vmem:[%s2735_s29 + $0xf0] sm:$0xff]  ;;  %v625_v49 = vld [vmem:[%s2735_s29 + $0x108] sm:$0xff] }
  0xc3   : > { %v577_v56 = vld [vmem:[#allocation8 + $0x188] sm:$0xff]  ;;  %v624_v57 = vld [vmem:[%s2735_s29 + $0x100] sm:$0xff]  ;;  %v626_v58 = vld [vmem:[%s2735_s29 + $0x110] sm:$0xff] }
  0xc4   : > { %1987 = vmatpush1.bf16.msra.mxu0 %v1986_v61  ;;  %v602_v61 = vld [vmem:[%s2735_s29 + $0x50] sm:$0xff]  ;;  %v629_v59 = vld [vmem:[%s2735_s29 + $0x128] sm:$0xff]  ;;  %v632_v14 = vld [vmem:[%s2735_s29 + $0x140] sm:$0xff] }
  0xc5   : > { %2035 = vmatpush1.bf16.msra.mxu1 %v2034_v62  ;;  %1988 = vmatprep.subr.bf16.mxu0 %v2465_v0  ;;  %v605_v62 = vld [vmem:[%s2735_s29 + $0x68] sm:$0xff]  ;;  %v638_v25 = vld [vmem:[%s2735_s29 + $0x170] sm:$0xff] }
  0xc6   : > { %2036 = vmatprep.subr.bf16.mxu1 %v2465_v0  ;;  %v581_v13 = vld [vmem:[#allocation8 + $0x1a8] sm:$0xff] }
  0xc7   : > { %v641_v26 = vld [vmem:[%s2735_s29 + $0x188] sm:$0xff] }
  0xc8   : > { %1990 = vmatpush1.bf16.msra.mxu0 %v1989_v4  ;;  %v535_v4 = vld [vmem:[#allocation8 + $0x38] sm:$0xff] }
  0xc9   : > { %2038 = vmatpush1.bf16.msra.mxu1 %v2037_v5  ;;  %1991 = vmatprep.subr.bf16.mxu0 %v2465_v0  ;;  %v566_v5 = vld [vmem:[#allocation8 + $0x130] sm:$0xff] }
  0xca   : > { %2039 = vmatprep.subr.bf16.mxu1 %v2465_v0  ;;  %v2112_v12 = vpack.c.bf16 %v567_v6, %v566_v5  ;;  %v630_v5 = vld [vmem:[%s2735_s29 + $0x130] sm:$0xff]  ;;  %v633_v6 = vld [vmem:[%s2735_s29 + $0x148] sm:$0xff] }
  0xcc   : > { %1993 = vmatpush1.bf16.msra.mxu0 %v1992_v10  ;;  %v2064_v10 = vpack.c.bf16 %v535_v4, %v534_v3  ;;  %v579_v3 = vld [vmem:[#allocation8 + $0x198] sm:$0xff]  ;;  %v628_v4 = vld [vmem:[%s2735_s29 + $0x120] sm:$0xff] }
  0xcd   : > { %2041 = vmatpush1.bf16.msra.mxu1 %v2040_v11  ;;  %1994 = vmatprep.subr.bf16.mxu0 %v2465_v0  ;;  %v611_v11 = vld [vmem:[%s2735_s29 + $0x98] sm:$0xff] }
  0xce   : > { %2042 = vmatprep.subr.bf16.mxu1 %v2465_v0 }
  0xd0   : > { %1996 = vmatpush1.bf16.msra.mxu0 %v1995_v16  ;;  %v569_v16 = vld [vmem:[#allocation8 + $0x148] sm:$0xff] }
  0xd1   : > { %2044 = vmatpush1.bf16.msra.mxu1 %v2043_v17  ;;  %1997 = vmatprep.subr.bf16.mxu0 %v2465_v0  ;;  %v608_v17 = vld [vmem:[%s2735_s29 + $0x80] sm:$0xff] }
  0xd2   : > { %2045 = vmatprep.subr.bf16.mxu1 %v2465_v0 }
  0xd4   : > { %1999 = vmatpush1.bf16.msra.mxu0 %v1998_v22  ;;  %v2115_v22 = vpack.c.bf16 %v569_v16, %v568_v15  ;;  %v634_v15 = vld [vmem:[%s2735_s29 + $0x150] sm:$0xff]  ;;  %v637_v16 = vld [vmem:[%s2735_s29 + $0x168] sm:$0xff] }
  0xd5   : > { %2047 = vmatpush1.bf16.msra.mxu1 %v2046_v23  ;;  %2000 = vmatprep.subr.bf16.mxu0 %v2465_v0  ;;  %v538_v23 = vld [vmem:[#allocation8 + $0x50] sm:$0xff] }
  0xd6   : > { %2048 = vmatprep.subr.bf16.mxu1 %v2465_v0  ;;  %v2070_v30 = vpack.c.bf16 %v539_v24, %v538_v23  ;;  %v583_v23 = vld [vmem:[#allocation8 + $0x1b8] sm:$0xff]  ;;  %v636_v24 = vld [vmem:[%s2735_s29 + $0x160] sm:$0xff] }
  0xd8   : > { %2002 = vmatpush1.bf16.msra.mxu0 %v2001_v28  ;;  %v614_v28 = vld [vmem:[%s2735_s29 + $0xb0] sm:$0xff] }
  0xd9   : > { %2050 = vmatpush1.bf16.msra.mxu1 %v2049_v29  ;;  %2003 = vmatprep.subr.bf16.mxu0 %v2465_v0  ;;  %v617_v29 = vld [vmem:[%s2735_s29 + $0xc8] sm:$0xff] }
  0xda   : > { %2051 = vmatprep.subr.bf16.mxu1 %v2465_v0 }
  0xdc   : > { %2005 = vmatpush1.bf16.msra.mxu0 %v2004_v34  ;;  %v541_v34 = vld [vmem:[#allocation8 + $0x68] sm:$0xff] }
  0xdd   : > { %2053 = vmatpush1.bf16.msra.mxu1 %v2052_v35  ;;  %2054 = vmatprep.subr.bf16.mxu0 %v2465_v0  ;;  %v572_v35 = vld [vmem:[#allocation8 + $0x160] sm:$0xff] }
  0xde   : > { %2102 = vmatprep.subr.bf16.mxu1 %v2465_v0 }
  0xdf   : > { %849 = vmatmul.mubr.f32.vlgmr.msra.gmra.mrb[0].mxu0 %v592_v40  ;;  %v2073_v40 = vpack.c.bf16 %v541_v34, %v540_v33  ;;  %v585_v33 = vld [vmem:[#allocation8 + $0x1c8] sm:$0xff]  ;;  %v640_v34 = vld [vmem:[%s2735_s29 + $0x180] sm:$0xff] }
  0xe0   : > { %1074 = vmatmul.mubr.f32.vlgmr.msra.gmra.mrb[0].mxu1 %v594_v42  ;;  %2056 = vmatpush1.bf16.msra.mxu0 %v2055_v41  ;;  %v623_v41 = vld [vmem:[%s2735_s29 + $0xf8] sm:$0xff]  ;;  %v2121_v42 = vpack.c.bf16 %v573_v36, %v572_v35  ;;  %v642_v35 = vld [vmem:[%s2735_s29 + $0x190] sm:$0xff]  ;;  %v645_v36 = vld [vmem:[%s2735_s29 + $0x1a8] sm:$0xff] }
  0xe1   : > { %853 = vmatprep.mubr.f32.mxu0 %v597_v44  ;;  %2104 = vmatpush1.bf16.msra.mxu1 %v2103_v43  ;;  %v542_v43 = vld [vmem:[#allocation8 + $0x70] sm:$0xff]  ;;  %v543_v44 = vld [vmem:[#allocation8 + $0x78] sm:$0xff] }
  0xe2   : > { %1078 = vmatprep.mubr.f32.mxu1 %v599_v47  ;;  %2057 = vmatprep.subr.bf16.mxu0 %v2465_v0  ;;  %v620_v47 = vld [vmem:[%s2735_s29 + $0xe0] sm:$0xff] }
  0xe3   : > { %854 = vmatmul.mubr.f32.gmra.mrb[2].mxu0 %v596_v50  ;;  %2105 = vmatprep.subr.bf16.mxu1 %v2465_v0  ;;  %v2076_v50 = vpack.c.bf16 %v543_v44, %v542_v43  ;;  %v587_v43 = vld [vmem:[#allocation8 + $0x1d8] sm:$0xff]  ;;  %v644_v44 = vld [vmem:[%s2735_s29 + $0x1a0] sm:$0xff] }
  0xe4   : > { %1079 = vmatmul.mubr.f32.gmra.mrb[2].mxu1 %v598_v51  ;;  %858 = vmatprep.mubr.f32.mxu0 %v601_v52  ;;  %v627_v51 = vld [vmem:[%s2735_s29 + $0x118] sm:$0xff]  ;;  %v2124_v52 = vpack.c.bf16 %v575_v46, %v574_v45  ;;  %v646_v45 = vld [vmem:[%s2735_s29 + $0x1b0] sm:$0xff]  ;;  %v649_v46 = vld [vmem:[%s2735_s29 + $0x1c8] sm:$0xff] }
  0xe5   : > { %1083 = vmatprep.mubr.f32.mxu1 %v603_v54  ;;  %2059 = vmatpush1.bf16.msra.mxu0 %v2058_v53  ;;  %v544_v53 = vld [vmem:[#allocation8 + $0x80] sm:$0xff]  ;;  %v545_v54 = vld [vmem:[#allocation8 + $0x88] sm:$0xff] }
  0xe6   : > { %2107 = vmatpush1.bf16.msra.mxu1 %v2106_v55  ;;  %2060 = vmatprep.subr.bf16.mxu0 %v2465_v0  ;;  %v576_v55 = vld [vmem:[#allocation8 + $0x180] sm:$0xff] }
  0xe7   : > { %859 = vmatmul.mubr.f32.gmra.mrb[4].mxu0 %v600_v60  ;;  %2108 = vmatprep.subr.bf16.mxu1 %v2465_v0  ;;  %v2079_v60 = vpack.c.bf16 %v545_v54, %v544_v53  ;;  %v589_v53 = vld [vmem:[#allocation8 + $0x1e8] sm:$0xff]  ;;  %v648_v54 = vld [vmem:[%s2735_s29 + $0x1c0] sm:$0xff] }
  0xe8   : > { %1084 = vmatmul.mubr.f32.gmra.mrb[4].mxu1 %v602_v61  ;;  %863 = vmatprep.mubr.f32.mxu0 %v605_v62  ;;  %v631_v61 = vld [vmem:[%s2735_s29 + $0x138] sm:$0xff]  ;;  %v2127_v62 = vpack.c.bf16 %v577_v56, %v576_v55  ;;  %v650_v55 = vld [vmem:[%s2735_s29 + $0x1d0] sm:$0xff]  ;;  %v653_v56 = vld [vmem:[%s2735_s29 + $0x1e8] sm:$0xff] }
  0xe9   : > { %1088 = vmatprep.mubr.f32.mxu1 %v607_v1  ;;  %2062 = vmatpush1.bf16.msra.mxu0 %v2061_v63  ;;  %v546_v63 = vld [vmem:[#allocation8 + $0x90] sm:$0xff]  ;;  %v547_v1 = vld [vmem:[#allocation8 + $0x98] sm:$0xff] }
  0xea   : > { %2110 = vmatpush1.bf16.msra.mxu1 %v2109_v2  ;;  %2063 = vmatprep.subr.bf16.mxu0 %v2465_v0  ;;  %v578_v2 = vld [vmem:[#allocation8 + $0x190] sm:$0xff] }
  0xeb   : > { %864 = vmatmul.mubr.f32.gmra.mrb[6].mxu0 %v604_v7  ;;  %2111 = vmatprep.subr.bf16.mxu1 %v2465_v0  ;;  %v2082_v7 = vpack.c.bf16 %v547_v1, %v546_v63  ;;  %v591_v63 = vld [vmem:[#allocation8 + $0x1f8] sm:$0xff]  ;;  %v652_v1 = vld [vmem:[%s2735_s29 + $0x1e0] sm:$0xff] }
  0xec   : > { %1089 = vmatmul.mubr.f32.gmra.mrb[6].mxu1 %v606_v8  ;;  %868 = vmatprep.mubr.f32.mxu0 %v609_v9  ;;  %v635_v8 = vld [vmem:[%s2735_s29 + $0x158] sm:$0xff]  ;;  %v2130_v9 = vpack.c.bf16 %v579_v3, %v578_v2  ;;  %v654_v2 = vld [vmem:[%s2735_s29 + $0x1f0] sm:$0xff]  ;;  %v657_v3 = vld [vmem:[%s2735_s29 + $0x208] sm:$0xff] }
  0xed   : > { %1093 = vmatprep.mubr.f32.mxu1 %v611_v11  ;;  %2065 = vmatpush1.bf16.msra.mxu0 %v2064_v10  ;;  %v548_v10 = vld [vmem:[#allocation8 + $0xa0] sm:$0xff]  ;;  %v549_v11 = vld [vmem:[#allocation8 + $0xa8] sm:$0xff] }
  0xee   : > { %2113 = vmatpush1.bf16.msra.mxu1 %v2112_v12  ;;  %2066 = vmatprep.subr.bf16.mxu0 %v2465_v0  ;;  %v580_v12 = vld [vmem:[#allocation8 + $0x1a0] sm:$0xff] }
  0xef   : > { %869 = vmatmul.mubr.f32.gmra.mrb[8].mxu0 %v608_v17  ;;  %2114 = vmatprep.subr.bf16.mxu1 %v2465_v0  ;;  %v2085_v17 = vpack.c.bf16 %v549_v11, %v548_v10  ;;  %v663_v10 = vld [vmem:[%s2735_s29 + $0x238] sm:$0xff]  ;;  %v660_v11 = vld [vmem:[%s2735_s29 + $0x220] sm:$0xff] }
  0xf0   : > { %1094 = vmatmul.mubr.f32.gmra.mrb[8].mxu1 %v610_v18  ;;  %873 = vmatprep.mubr.f32.mxu0 %v613_v19  ;;  %v639_v18 = vld [vmem:[%s2735_s29 + $0x178] sm:$0xff]  ;;  %v2133_v19 = vpack.c.bf16 %v581_v13, %v580_v12  ;;  %v665_v12 = vld [vmem:[%s2735_s29 + $0x248] sm:$0xff] }
  0xf1   : > { %1098 = vmatprep.mubr.f32.mxu1 %v615_v21  ;;  %2068 = vmatpush1.bf16.msra.mxu0 %v2067_v20  ;;  %v550_v20 = vld [vmem:[#allocation8 + $0xb0] sm:$0xff]  ;;  %v551_v21 = vld [vmem:[#allocation8 + $0xb8] sm:$0xff] }
  0xf2   : > { %2116 = vmatpush1.bf16.msra.mxu1 %v2115_v22  ;;  %2069 = vmatprep.subr.bf16.mxu0 %v2465_v0  ;;  %v582_v22 = vld [vmem:[#allocation8 + $0x1b0] sm:$0xff]  ;;  %v667_v13 = vld [vmem:[%s2735_s29 + $0x258] sm:$0xff] }
  0xf3   : > { %874 = vmatmul.mubr.f32.gmra.mrb[10].mxu0 %v612_v27  ;;  %2117 = vmatprep.subr.bf16.mxu1 %v2465_v0  ;;  %v2088_v27 = vpack.c.bf16 %v551_v21, %v550_v20  ;;  %v673_v20 = vld [vmem:[%s2735_s29 + $0x288] sm:$0xff]  ;;  %v675_v21 = vld [vmem:[%s2735_s29 + $0x298] sm:$0xff] }
  0xf4   : > { %1099 = vmatmul.mubr.f32.gmra.mrb[10].mxu1 %v614_v28  ;;  %878 = vmatprep.mubr.f32.mxu0 %v617_v29  ;;  %v643_v28 = vld [vmem:[%s2735_s29 + $0x198] sm:$0xff]  ;;  %v2136_v29 = vpack.c.bf16 %v583_v23, %v582_v22  ;;  %v672_v22 = vld [vmem:[%s2735_s29 + $0x280] sm:$0xff]  ;;  %v674_v23 = vld [vmem:[%s2735_s29 + $0x290] sm:$0xff] }
  0xf5   : > { %1103 = vmatprep.mubr.f32.mxu1 %v619_v31  ;;  %2071 = vmatpush1.bf16.msra.mxu0 %v2070_v30  ;;  %v552_v30 = vld [vmem:[#allocation8 + $0xc0] sm:$0xff]  ;;  %v553_v31 = vld [vmem:[#allocation8 + $0xc8] sm:$0xff] }
  0xf6   : > { %2119 = vmatpush1.bf16.msra.mxu1 %v2118_v32  ;;  %2072 = vmatprep.subr.bf16.mxu0 %v2465_v0  ;;  %v584_v32 = vld [vmem:[#allocation8 + $0x1c0] sm:$0xff] }
  0xf7   : > { %879 = vmatmul.mubr.f32.gmra.mrb[12].mxu0 %v616_v37  ;;  %2120 = vmatprep.subr.bf16.mxu1 %v2465_v0  ;;  %v2091_v37 = vpack.c.bf16 %v553_v31, %v552_v30  ;;  %v680_v30 = vld [vmem:[%s2735_s29 + $0x2c0] sm:$0xff]  ;;  %v682_v31 = vld [vmem:[%s2735_s29 + $0x2d0] sm:$0xff] }
  0xf8   : > { %1104 = vmatmul.mubr.f32.gmra.mrb[12].mxu1 %v618_v38  ;;  %883 = vmatprep.mubr.f32.mxu0 %v621_v39  ;;  %v647_v38 = vld [vmem:[%s2735_s29 + $0x1b8] sm:$0xff]  ;;  %v2139_v39 = vpack.c.bf16 %v585_v33, %v584_v32  ;;  %v685_v32 = vld [vmem:[%s2735_s29 + $0x2e8] sm:$0xff] }
  0xf9   : > { %1108 = vmatprep.mubr.f32.mxu1 %v623_v41  ;;  %2074 = vmatpush1.bf16.msra.mxu0 %v2073_v40  ;;  %v554_v40 = vld [vmem:[#allocation8 + $0xd0] sm:$0xff]  ;;  %v555_v41 = vld [vmem:[#allocation8 + $0xd8] sm:$0xff] }
  0xfa   : > { %2122 = vmatpush1.bf16.msra.mxu1 %v2121_v42  ;;  %2075 = vmatprep.subr.bf16.mxu0 %v2465_v0  ;;  %v586_v42 = vld [vmem:[#allocation8 + $0x1d0] sm:$0xff]  ;;  %v687_v33 = vld [vmem:[%s2735_s29 + $0x2f8] sm:$0xff] }
  0xfb   : > { %884 = vmatmul.mubr.f32.gmra.mrb[14].mxu0 %v620_v47  ;;  %2123 = vmatprep.subr.bf16.mxu1 %v2465_v0  ;;  %v2094_v47 = vpack.c.bf16 %v555_v41, %v554_v40  ;;  %v693_v40 = vld [vmem:[%s2735_s29 + $0x328] sm:$0xff]  ;;  %v695_v41 = vld [vmem:[%s2735_s29 + $0x338] sm:$0xff] }
  0xfc   : > { %1109 = vmatmul.mubr.f32.gmra.mrb[14].mxu1 %v622_v48  ;;  %888 = vmatprep.mubr.f32.mxu0 %v625_v49  ;;  %v651_v48 = vld [vmem:[%s2735_s29 + $0x1d8] sm:$0xff]  ;;  %v2142_v49 = vpack.c.bf16 %v587_v43, %v586_v42  ;;  %v692_v42 = vld [vmem:[%s2735_s29 + $0x320] sm:$0xff]  ;;  %v694_v43 = vld [vmem:[%s2735_s29 + $0x330] sm:$0xff] }
  0xfd   : > { %1113 = vmatprep.mubr.f32.mxu1 %v627_v51  ;;  %2077 = vmatpush1.bf16.msra.mxu0 %v2076_v50  ;;  %v556_v50 = vld [vmem:[#allocation8 + $0xe0] sm:$0xff]  ;;  %v557_v51 = vld [vmem:[#allocation8 + $0xe8] sm:$0xff] }
  0xfe   : > { %2125 = vmatpush1.bf16.msra.mxu1 %v2124_v52  ;;  %2078 = vmatprep.subr.bf16.mxu0 %v2465_v0  ;;  %v588_v52 = vld [vmem:[#allocation8 + $0x1e0] sm:$0xff] }
  0xff   : > { %889 = vmatmul.mubr.f32.gmra.mrb[16].mxu0 %v624_v57  ;;  %2126 = vmatprep.subr.bf16.mxu1 %v2465_v0  ;;  %v2097_v57 = vpack.c.bf16 %v557_v51, %v556_v50  ;;  %v700_v50 = vld [vmem:[%s2735_s29 + $0x360] sm:$0xff]  ;;  %v702_v51 = vld [vmem:[%s2735_s29 + $0x370] sm:$0xff] }
 0x100   : > { %1114 = vmatmul.mubr.f32.gmra.mrb[16].mxu1 %v626_v58  ;;  %893 = vmatprep.mubr.f32.mxu0 %v629_v59  ;;  %v655_v58 = vld [vmem:[%s2735_s29 + $0x1f8] sm:$0xff]  ;;  %v2145_v59 = vpack.c.bf16 %v589_v53, %v588_v52  ;;  %v705_v52 = vld [vmem:[%s2735_s29 + $0x388] sm:$0xff] }
 0x101   : > { %1118 = vmatprep.mubr.f32.mxu1 %v631_v61  ;;  %2080 = vmatpush1.bf16.msra.mxu0 %v2079_v60  ;;  %v558_v60 = vld [vmem:[#allocation8 + $0xf0] sm:$0xff]  ;;  %v559_v61 = vld [vmem:[#allocation8 + $0xf8] sm:$0xff] }
 0x102   : > { %2128 = vmatpush1.bf16.msra.mxu1 %v2127_v62  ;;  %2081 = vmatprep.subr.bf16.mxu0 %v2465_v0  ;;  %v590_v62 = vld [vmem:[#allocation8 + $0x1f0] sm:$0xff]  ;;  %v707_v53 = vld [vmem:[%s2735_s29 + $0x398] sm:$0xff] }
 0x103   : > { %894 = vmatmul.mubr.f32.gmra.mrb[18].mxu0 %v628_v4  ;;  %2129 = vmatprep.subr.bf16.mxu1 %v2465_v0  ;;  %v2100_v4 = vpack.c.bf16 %v559_v61, %v558_v60  ;;  %v713_v60 = vld [vmem:[%s2735_s29 + $0x3c8] sm:$0xff]  ;;  %v715_v61 = vld [vmem:[%s2735_s29 + $0x3d8] sm:$0xff] }
 0x104   : > { %1119 = vmatmul.mubr.f32.gmra.mrb[18].mxu1 %v630_v5  ;;  %898 = vmatprep.mubr.f32.mxu0 %v633_v6  ;;  %v659_v5 = vld [vmem:[%s2735_s29 + $0x218] sm:$0xff]  ;;  %v2148_v6 = vpack.c.bf16 %v591_v63, %v590_v62  ;;  %v712_v62 = vld [vmem:[%s2735_s29 + $0x3c0] sm:$0xff]  ;;  %v714_v63 = vld [vmem:[%s2735_s29 + $0x3d0] sm:$0xff] }
 0x105   : > { %1123 = vmatprep.mubr.f32.mxu1 %v635_v8  ;;  %2083 = vmatpush1.bf16.msra.mxu0 %v2082_v7  ;;  %v656_v7 = vld [vmem:[%s2735_s29 + $0x200] sm:$0xff]  ;;  %v658_v8 = vld [vmem:[%s2735_s29 + $0x210] sm:$0xff] }
 0x106   : > { %2131 = vmatpush1.bf16.msra.mxu1 %v2130_v9  ;;  %2084 = vmatprep.subr.bf16.mxu0 %v2465_v0  ;;  %v661_v9 = vld [vmem:[%s2735_s29 + $0x228] sm:$0xff] }
 0x107   : > { %899 = vmatmul.mubr.f32.gmra.mrb[20].mxu0 %v632_v14  ;;  %2132 = vmatprep.subr.bf16.mxu1 %v2465_v0  ;;  %v664_v14 = vld [vmem:[%s2735_s29 + $0x240] sm:$0xff] }
 0x108   : > { %1124 = vmatmul.mubr.f32.gmra.mrb[20].mxu1 %v634_v15  ;;  %903 = vmatprep.mubr.f32.mxu0 %v637_v16  ;;  %v666_v15 = vld [vmem:[%s2735_s29 + $0x250] sm:$0xff]  ;;  %v669_v16 = vld [vmem:[%s2735_s29 + $0x268] sm:$0xff] }
 0x109   : > { %1128 = vmatprep.mubr.f32.mxu1 %v639_v18  ;;  %2086 = vmatpush1.bf16.msra.mxu0 %v2085_v17  ;;  %v671_v17 = vld [vmem:[%s2735_s29 + $0x278] sm:$0xff]  ;;  %v668_v18 = vld [vmem:[%s2735_s29 + $0x260] sm:$0xff] }
 0x10a   : > { %2134 = vmatpush1.bf16.msra.mxu1 %v2133_v19  ;;  %2087 = vmatprep.subr.bf16.mxu0 %v2465_v0  ;;  %v670_v19 = vld [vmem:[%s2735_s29 + $0x270] sm:$0xff] }
 0x10b   : > { %904 = vmatmul.mubr.f32.gmra.mrb[22].mxu0 %v636_v24  ;;  %2135 = vmatprep.subr.bf16.mxu1 %v2465_v0  ;;  %v677_v24 = vld [vmem:[%s2735_s29 + $0x2a8] sm:$0xff] }
 0x10c   : > { %1129 = vmatmul.mubr.f32.gmra.mrb[22].mxu1 %v638_v25  ;;  %908 = vmatprep.mubr.f32.mxu0 %v641_v26  ;;  %v679_v25 = vld [vmem:[%s2735_s29 + $0x2b8] sm:$0xff]  ;;  %v676_v26 = vld [vmem:[%s2735_s29 + $0x2a0] sm:$0xff] }
 0x10d   : > { %1133 = vmatprep.mubr.f32.mxu1 %v643_v28  ;;  %2089 = vmatpush1.bf16.msra.mxu0 %v2088_v27  ;;  %v678_v27 = vld [vmem:[%s2735_s29 + $0x2b0] sm:$0xff]  ;;  %v681_v28 = vld [vmem:[%s2735_s29 + $0x2c8] sm:$0xff] }
 0x10e   : > { %2137 = vmatpush1.bf16.msra.mxu1 %v2136_v29  ;;  %2090 = vmatprep.subr.bf16.mxu0 %v2465_v0  ;;  %v683_v29 = vld [vmem:[%s2735_s29 + $0x2d8] sm:$0xff] }
 0x10f   : > { %909 = vmatmul.mubr.f32.gmra.mrb[24].mxu0 %v640_v34  ;;  %2138 = vmatprep.subr.bf16.mxu1 %v2465_v0  ;;  %v684_v34 = vld [vmem:[%s2735_s29 + $0x2e0] sm:$0xff] }
 0x110   : > { %1134 = vmatmul.mubr.f32.gmra.mrb[24].mxu1 %v642_v35  ;;  %913 = vmatprep.mubr.f32.mxu0 %v645_v36  ;;  %v686_v35 = vld [vmem:[%s2735_s29 + $0x2f0] sm:$0xff]  ;;  %v689_v36 = vld [vmem:[%s2735_s29 + $0x308] sm:$0xff] }
 0x111   : > { %1138 = vmatprep.mubr.f32.mxu1 %v647_v38  ;;  %2092 = vmatpush1.bf16.msra.mxu0 %v2091_v37  ;;  %v691_v37 = vld [vmem:[%s2735_s29 + $0x318] sm:$0xff]  ;;  %v688_v38 = vld [vmem:[%s2735_s29 + $0x300] sm:$0xff] }
 0x112   : > { %2140 = vmatpush1.bf16.msra.mxu1 %v2139_v39  ;;  %2093 = vmatprep.subr.bf16.mxu0 %v2465_v0  ;;  %v690_v39 = vld [vmem:[%s2735_s29 + $0x310] sm:$0xff] }
 0x113   : > { %914 = vmatmul.mubr.f32.gmra.mrb[26].mxu0 %v644_v44  ;;  %2141 = vmatprep.subr.bf16.mxu1 %v2465_v0  ;;  %v697_v44 = vld [vmem:[%s2735_s29 + $0x348] sm:$0xff] }
 0x114   : > { %1139 = vmatmul.mubr.f32.gmra.mrb[26].mxu1 %v646_v45  ;;  %918 = vmatprep.mubr.f32.mxu0 %v649_v46  ;;  %v699_v45 = vld [vmem:[%s2735_s29 + $0x358] sm:$0xff]  ;;  %v696_v46 = vld [vmem:[%s2735_s29 + $0x340] sm:$0xff] }
 0x115   : > { %1143 = vmatprep.mubr.f32.mxu1 %v651_v48  ;;  %2095 = vmatpush1.bf16.msra.mxu0 %v2094_v47  ;;  %v698_v47 = vld [vmem:[%s2735_s29 + $0x350] sm:$0xff]  ;;  %v701_v48 = vld [vmem:[%s2735_s29 + $0x368] sm:$0xff] }
 0x116   : > { %2143 = vmatpush1.bf16.msra.mxu1 %v2142_v49  ;;  %2096 = vmatprep.subr.bf16.mxu0 %v2465_v0  ;;  %v703_v49 = vld [vmem:[%s2735_s29 + $0x378] sm:$0xff] }
 0x117   : > { %919 = vmatmul.mubr.f32.gmra.mrb[28].mxu0 %v648_v54  ;;  %2144 = vmatprep.subr.bf16.mxu1 %v2465_v0  ;;  %v704_v54 = vld [vmem:[%s2735_s29 + $0x380] sm:$0xff] }
 0x118   : > { %1144 = vmatmul.mubr.f32.gmra.mrb[28].mxu1 %v650_v55  ;;  %923 = vmatprep.mubr.f32.mxu0 %v653_v56  ;;  %v706_v55 = vld [vmem:[%s2735_s29 + $0x390] sm:$0xff]  ;;  %v709_v56 = vld [vmem:[%s2735_s29 + $0x3a8] sm:$0xff] }
 0x119   : > { %1148 = vmatprep.mubr.f32.mxu1 %v655_v58  ;;  %2098 = vmatpush1.bf16.msra.mxu0 %v2097_v57  ;;  %v711_v57 = vld [vmem:[%s2735_s29 + $0x3b8] sm:$0xff]  ;;  %v708_v58 = vld [vmem:[%s2735_s29 + $0x3a0] sm:$0xff] }
 0x11a   : > { %2146 = vmatpush1.bf16.msra.mxu1 %v2145_v59  ;;  %2099 = vmatprep.subr.bf16.mxu0 %v2465_v0  ;;  %v710_v59 = vld [vmem:[%s2735_s29 + $0x3b0] sm:$0xff] }
 0x11b   : > { %924 = vmatmul.mubr.f32.gmra.mrb[30].mxu0 %v652_v1  ;;  %2147 = vmatprep.subr.bf16.mxu1 %v2465_v0  ;;  %v662_v0 = vld [vmem:[%s2735_s29 + $0x230] sm:$0xff]  ;;  %v717_v1 = vld [vmem:[%s2735_s29 + $0x3e8] sm:$0xff] }
 0x11c   : > { %1149 = vmatmul.mubr.f32.gmra.mrb[30].mxu1 %v654_v2  ;;  %928 = vmatprep.mubr.f32.mxu0 %v657_v3  ;;  %v719_v2 = vld [vmem:[%s2735_s29 + $0x3f8] sm:$0xff]  ;;  %v716_v3 = vld [vmem:[%s2735_s29 + $0x3e0] sm:$0xff] }
 0x11d   : > { %1153 = vmatprep.mubr.f32.mxu1 %v659_v5  ;;  %2101 = vmatpush1.bf16.msra.mxu0 %v2100_v4  ;;  %v718_v4 = vld [vmem:[%s2735_s29 + $0x3f0] sm:$0xff]  ;;  %v401_v5 = vld [vmem:[%s2742_s28 + $0x8] sm:$0xff] }
 0x11e   : > { %2149 = vmatpush1.bf16.msra.mxu1 %v2148_v6  ;;  %v403_v6 = vld [vmem:[%s2742_s28 + $0x18] sm:$0xff] }
 0x11f   : > { %929 = vmatmul.mubr.f32.gmra.mrb[32].mxu0 %v656_v7  ;;  %v400_v7 = vld [vmem:[%s2742_s28] sm:$0xff] }
 0x120   : > { %1154 = vmatmul.mubr.f32.gmra.mrb[32].mxu1 %v658_v8  ;;  %933 = vmatprep.mubr.f32.mxu0 %v661_v9  ;;  %v402_v8 = vld [vmem:[%s2742_s28 + $0x10] sm:$0xff]  ;;  %v405_v9 = vld [vmem:[%s2742_s28 + $0x28] sm:$0xff] }
 0x121   : > { %1158 = vmatprep.mubr.f32.mxu1 %v663_v10  ;;  %v407_v10 = vld [vmem:[%s2742_s28 + $0x38] sm:$0xff] }
 0x123   : > { %934 = vmatmul.mubr.f32.gmra.mrb[34].mxu0 %v660_v11  ;;  %v404_v11 = vld [vmem:[%s2742_s28 + $0x20] sm:$0xff] }
 0x124   : > { %1159 = vmatmul.mubr.f32.gmra.mrb[34].mxu1 %v662_v0  ;;  %938 = vmatprep.mubr.f32.mxu0 %v665_v12  ;;  %v406_v0 = vld [vmem:[%s2742_s28 + $0x30] sm:$0xff]  ;;  %v409_v12 = vld [vmem:[%s2742_s28 + $0x48] sm:$0xff] }
 0x125   : > { %1163 = vmatprep.mubr.f32.mxu1 %v667_v13  ;;  %v411_v13 = vld [vmem:[%s2742_s28 + $0x58] sm:$0xff] }
 0x127   : > { %939 = vmatmul.mubr.f32.gmra.mrb[36].mxu0 %v664_v14  ;;  %v408_v14 = vld [vmem:[%s2742_s28 + $0x40] sm:$0xff] }
 0x128   : > { %1164 = vmatmul.mubr.f32.gmra.mrb[36].mxu1 %v666_v15  ;;  %943 = vmatprep.mubr.f32.mxu0 %v669_v16  ;;  %v410_v15 = vld [vmem:[%s2742_s28 + $0x50] sm:$0xff]  ;;  %v413_v16 = vld [vmem:[%s2742_s28 + $0x68] sm:$0xff] }
 0x129   : > { %1168 = vmatprep.mubr.f32.mxu1 %v671_v17  ;;  %v415_v17 = vld [vmem:[%s2742_s28 + $0x78] sm:$0xff] }
 0x12b   : > { %944 = vmatmul.mubr.f32.gmra.mrb[38].mxu0 %v668_v18  ;;  %v412_v18 = vld [vmem:[%s2742_s28 + $0x60] sm:$0xff] }
 0x12c   : > { %1169 = vmatmul.mubr.f32.gmra.mrb[38].mxu1 %v670_v19  ;;  %948 = vmatprep.mubr.f32.mxu0 %v673_v20  ;;  %v414_v19 = vld [vmem:[%s2742_s28 + $0x70] sm:$0xff]  ;;  %v417_v20 = vld [vmem:[%s2742_s28 + $0x88] sm:$0xff] }
 0x12d   : > { %1173 = vmatprep.mubr.f32.mxu1 %v675_v21  ;;  %v419_v21 = vld [vmem:[%s2742_s28 + $0x98] sm:$0xff] }
 0x12f   : > { %949 = vmatmul.mubr.f32.gmra.mrb[40].mxu0 %v672_v22  ;;  %v416_v22 = vld [vmem:[%s2742_s28 + $0x80] sm:$0xff] }
 0x130   : > { %1174 = vmatmul.mubr.f32.gmra.mrb[40].mxu1 %v674_v23  ;;  %953 = vmatprep.mubr.f32.mxu0 %v677_v24  ;;  %v418_v23 = vld [vmem:[%s2742_s28 + $0x90] sm:$0xff]  ;;  %v421_v24 = vld [vmem:[%s2742_s28 + $0xa8] sm:$0xff] }
 0x131   : > { %1178 = vmatprep.mubr.f32.mxu1 %v679_v25  ;;  %v423_v25 = vld [vmem:[%s2742_s28 + $0xb8] sm:$0xff] }
 0x133   : > { %954 = vmatmul.mubr.f32.gmra.mrb[42].mxu0 %v676_v26  ;;  %v420_v26 = vld [vmem:[%s2742_s28 + $0xa0] sm:$0xff] }
 0x134   : > { %1179 = vmatmul.mubr.f32.gmra.mrb[42].mxu1 %v678_v27  ;;  %958 = vmatprep.mubr.f32.mxu0 %v681_v28  ;;  %v422_v27 = vld [vmem:[%s2742_s28 + $0xb0] sm:$0xff]  ;;  %v425_v28 = vld [vmem:[%s2742_s28 + $0xc8] sm:$0xff] }
 0x135   : > { %1183 = vmatprep.mubr.f32.mxu1 %v683_v29  ;;  %v427_v29 = vld [vmem:[%s2742_s28 + $0xd8] sm:$0xff] }
 0x137   : > { %959 = vmatmul.mubr.f32.gmra.mrb[44].mxu0 %v680_v30  ;;  %v424_v30 = vld [vmem:[%s2742_s28 + $0xc0] sm:$0xff] }
 0x138   : > { %1184 = vmatmul.mubr.f32.gmra.mrb[44].mxu1 %v682_v31  ;;  %963 = vmatprep.mubr.f32.mxu0 %v685_v32  ;;  %v426_v31 = vld [vmem:[%s2742_s28 + $0xd0] sm:$0xff]  ;;  %v429_v32 = vld [vmem:[%s2742_s28 + $0xe8] sm:$0xff] }
 0x139   : > { %1188 = vmatprep.mubr.f32.mxu1 %v687_v33  ;;  %v431_v33 = vld [vmem:[%s2742_s28 + $0xf8] sm:$0xff] }
 0x13b   : > { %964 = vmatmul.mubr.f32.gmra.mrb[46].mxu0 %v684_v34  ;;  %v428_v34 = vld [vmem:[%s2742_s28 + $0xe0] sm:$0xff] }
 0x13c   : > { %1189 = vmatmul.mubr.f32.gmra.mrb[46].mxu1 %v686_v35  ;;  %968 = vmatprep.mubr.f32.mxu0 %v689_v36  ;;  %v430_v35 = vld [vmem:[%s2742_s28 + $0xf0] sm:$0xff]  ;;  %v433_v36 = vld [vmem:[%s2742_s28 + $0x108] sm:$0xff] }
 0x13d   : > { %1193 = vmatprep.mubr.f32.mxu1 %v691_v37  ;;  %v435_v37 = vld [vmem:[%s2742_s28 + $0x118] sm:$0xff] }
 0x13f   : > { %969 = vmatmul.mubr.f32.gmra.mrb[48].mxu0 %v688_v38  ;;  %v432_v38 = vld [vmem:[%s2742_s28 + $0x100] sm:$0xff] }
 0x140   : > { %1194 = vmatmul.mubr.f32.gmra.mrb[48].mxu1 %v690_v39  ;;  %973 = vmatprep.mubr.f32.mxu0 %v693_v40  ;;  %v434_v39 = vld [vmem:[%s2742_s28 + $0x110] sm:$0xff]  ;;  %v437_v40 = vld [vmem:[%s2742_s28 + $0x128] sm:$0xff] }
 0x141   : > { %1198 = vmatprep.mubr.f32.mxu1 %v695_v41  ;;  %v439_v41 = vld [vmem:[%s2742_s28 + $0x138] sm:$0xff] }
 0x143   : > { %974 = vmatmul.mubr.f32.gmra.mrb[50].mxu0 %v692_v42  ;;  %v436_v42 = vld [vmem:[%s2742_s28 + $0x120] sm:$0xff] }
 0x144   : > { %1199 = vmatmul.mubr.f32.gmra.mrb[50].mxu1 %v694_v43  ;;  %978 = vmatprep.mubr.f32.mxu0 %v697_v44  ;;  %v438_v43 = vld [vmem:[%s2742_s28 + $0x130] sm:$0xff]  ;;  %v441_v44 = vld [vmem:[%s2742_s28 + $0x148] sm:$0xff] }
 0x145   : > { %1203 = vmatprep.mubr.f32.mxu1 %v699_v45  ;;  %v443_v45 = vld [vmem:[%s2742_s28 + $0x158] sm:$0xff] }
 0x147   : > { %979 = vmatmul.mubr.f32.gmra.mrb[52].mxu0 %v696_v46  ;;  %v440_v46 = vld [vmem:[%s2742_s28 + $0x140] sm:$0xff] }
 0x148   : > { %1204 = vmatmul.mubr.f32.gmra.mrb[52].mxu1 %v698_v47  ;;  %983 = vmatprep.mubr.f32.mxu0 %v701_v48  ;;  %v442_v47 = vld [vmem:[%s2742_s28 + $0x150] sm:$0xff]  ;;  %v445_v48 = vld [vmem:[%s2742_s28 + $0x168] sm:$0xff] }
 0x149   : > { %1208 = vmatprep.mubr.f32.mxu1 %v703_v49  ;;  %v447_v49 = vld [vmem:[%s2742_s28 + $0x178] sm:$0xff] }
 0x14b   : > { %984 = vmatmul.mubr.f32.gmra.mrb[54].mxu0 %v700_v50  ;;  %v444_v50 = vld [vmem:[%s2742_s28 + $0x160] sm:$0xff] }
 0x14c   : > { %1209 = vmatmul.mubr.f32.gmra.mrb[54].mxu1 %v702_v51  ;;  %988 = vmatprep.mubr.f32.mxu0 %v705_v52  ;;  %v446_v51 = vld [vmem:[%s2742_s28 + $0x170] sm:$0xff]  ;;  %v449_v52 = vld [vmem:[%s2742_s28 + $0x188] sm:$0xff] }
 0x14d   : > { %1213 = vmatprep.mubr.f32.mxu1 %v707_v53  ;;  %v451_v53 = vld [vmem:[%s2742_s28 + $0x198] sm:$0xff] }
 0x14f   : > { %989 = vmatmul.mubr.f32.gmra.mrb[56].mxu0 %v704_v54  ;;  %v448_v54 = vld [vmem:[%s2742_s28 + $0x180] sm:$0xff] }
 0x150   : > { %1214 = vmatmul.mubr.f32.gmra.mrb[56].mxu1 %v706_v55  ;;  %993 = vmatprep.mubr.f32.mxu0 %v709_v56  ;;  %v450_v55 = vld [vmem:[%s2742_s28 + $0x190] sm:$0xff]  ;;  %v453_v56 = vld [vmem:[%s2742_s28 + $0x1a8] sm:$0xff] }
 0x151   : > { %1218 = vmatprep.mubr.f32.mxu1 %v711_v57  ;;  %v455_v57 = vld [vmem:[%s2742_s28 + $0x1b8] sm:$0xff] }
 0x153   : > { %994 = vmatmul.mubr.f32.gmra.mrb[58].mxu0 %v708_v58  ;;  %v452_v58 = vld [vmem:[%s2742_s28 + $0x1a0] sm:$0xff] }
 0x154   : > { %1219 = vmatmul.mubr.f32.gmra.mrb[58].mxu1 %v710_v59  ;;  %998 = vmatprep.mubr.f32.mxu0 %v713_v60  ;;  %v454_v59 = vld [vmem:[%s2742_s28 + $0x1b0] sm:$0xff]  ;;  %v457_v60 = vld [vmem:[%s2742_s28 + $0x1c8] sm:$0xff] }
 0x155   : > { %1223 = vmatprep.mubr.f32.mxu1 %v715_v61  ;;  %v459_v61 = vld [vmem:[%s2742_s28 + $0x1d8] sm:$0xff] }
 0x157   : > { %999 = vmatmul.mubr.f32.gmra.mrb[60].mxu0 %v712_v62  ;;  %v456_v62 = vld [vmem:[%s2742_s28 + $0x1c0] sm:$0xff] }
 0x158   : > { %1224 = vmatmul.mubr.f32.gmra.mrb[60].mxu1 %v714_v63  ;;  %1003 = vmatprep.mubr.f32.mxu0 %v717_v1  ;;  %v458_v63 = vld [vmem:[%s2742_s28 + $0x1d0] sm:$0xff]  ;;  %v461_v1 = vld [vmem:[%s2742_s28 + $0x1e8] sm:$0xff] }
 0x159   : > { %1228 = vmatprep.mubr.f32.mxu1 %v719_v2  ;;  %v463_v2 = vld [vmem:[%s2742_s28 + $0x1f8] sm:$0xff] }
 0x15b   : > { %1004 = vmatmul.mubr.f32.gmra.mrb[62].mxu0 %v716_v3  ;;  %v460_v3 = vld [vmem:[%s2742_s28 + $0x1e0] sm:$0xff] }
 0x15c   : > { %1229 = vmatmul.mubr.f32.gmra.mrb[62].mxu1 %v718_v4  ;;  %1298 = vmatprep.mubr.f32.mxu0 %v401_v5  ;;  %v462_v4 = vld [vmem:[%s2742_s28 + $0x1f0] sm:$0xff]  ;;  %v465_v5 = vld [vmem:[%s2742_s28 + $0x208] sm:$0xff] }
 0x15d   : > { %1523 = vmatprep.mubr.f32.mxu1 %v403_v6  ;;  %v467_v6 = vld [vmem:[%s2742_s28 + $0x218] sm:$0xff] }
 0x15f   : > { %1299 = vmatmul.mubr.f32.vlgmr.msra.gmra.mrb[64].mxu0 %v400_v7  ;;  %v464_v7 = vld [vmem:[%s2742_s28 + $0x200] sm:$0xff] }
 0x160   : > { %1524 = vmatmul.mubr.f32.vlgmr.msra.gmra.mrb[64].mxu1 %v402_v8  ;;  %1303 = vmatprep.mubr.f32.mxu0 %v405_v9  ;;  %v466_v8 = vld [vmem:[%s2742_s28 + $0x210] sm:$0xff]  ;;  %v469_v9 = vld [vmem:[%s2742_s28 + $0x228] sm:$0xff] }
 0x161   : > { %1528 = vmatprep.mubr.f32.mxu1 %v407_v10  ;;  %v471_v10 = vld [vmem:[%s2742_s28 + $0x238] sm:$0xff] }
 0x163   : > { %1304 = vmatmul.mubr.f32.gmra.mrb[66].mxu0 %v404_v11  ;;  %v468_v11 = vld [vmem:[%s2742_s28 + $0x220] sm:$0xff] }
 0x164   : > { %1529 = vmatmul.mubr.f32.gmra.mrb[66].mxu1 %v406_v0  ;;  %1308 = vmatprep.mubr.f32.mxu0 %v409_v12  ;;  %v470_v0 = vld [vmem:[%s2742_s28 + $0x230] sm:$0xff]  ;;  %v473_v12 = vld [vmem:[%s2742_s28 + $0x248] sm:$0xff] }
 0x165   : > { %1533 = vmatprep.mubr.f32.mxu1 %v411_v13  ;;  %v475_v13 = vld [vmem:[%s2742_s28 + $0x258] sm:$0xff] }
 0x167   : > { %1309 = vmatmul.mubr.f32.gmra.mrb[68].mxu0 %v408_v14  ;;  %v472_v14 = vld [vmem:[%s2742_s28 + $0x240] sm:$0xff] }
 0x168   : > { %1534 = vmatmul.mubr.f32.gmra.mrb[68].mxu1 %v410_v15  ;;  %1313 = vmatprep.mubr.f32.mxu0 %v413_v16  ;;  %v474_v15 = vld [vmem:[%s2742_s28 + $0x250] sm:$0xff]  ;;  %v477_v16 = vld [vmem:[%s2742_s28 + $0x268] sm:$0xff] }
 0x169   : > { %1538 = vmatprep.mubr.f32.mxu1 %v415_v17  ;;  %v479_v17 = vld [vmem:[%s2742_s28 + $0x278] sm:$0xff] }
 0x16b   : > { %1314 = vmatmul.mubr.f32.gmra.mrb[70].mxu0 %v412_v18  ;;  %v476_v18 = vld [vmem:[%s2742_s28 + $0x260] sm:$0xff] }
 0x16c   : > { %1539 = vmatmul.mubr.f32.gmra.mrb[70].mxu1 %v414_v19  ;;  %1318 = vmatprep.mubr.f32.mxu0 %v417_v20  ;;  %v478_v19 = vld [vmem:[%s2742_s28 + $0x270] sm:$0xff]  ;;  %v481_v20 = vld [vmem:[%s2742_s28 + $0x288] sm:$0xff] }
 0x16d   : > { %1543 = vmatprep.mubr.f32.mxu1 %v419_v21  ;;  %v483_v21 = vld [vmem:[%s2742_s28 + $0x298] sm:$0xff] }
 0x16f   : > { %1319 = vmatmul.mubr.f32.gmra.mrb[72].mxu0 %v416_v22  ;;  %v480_v22 = vld [vmem:[%s2742_s28 + $0x280] sm:$0xff] }
 0x170   : > { %1544 = vmatmul.mubr.f32.gmra.mrb[72].mxu1 %v418_v23  ;;  %1323 = vmatprep.mubr.f32.mxu0 %v421_v24  ;;  %v482_v23 = vld [vmem:[%s2742_s28 + $0x290] sm:$0xff]  ;;  %v485_v24 = vld [vmem:[%s2742_s28 + $0x2a8] sm:$0xff] }
 0x171   : > { %1548 = vmatprep.mubr.f32.mxu1 %v423_v25  ;;  %v487_v25 = vld [vmem:[%s2742_s28 + $0x2b8] sm:$0xff] }
 0x173   : > { %1324 = vmatmul.mubr.f32.gmra.mrb[74].mxu0 %v420_v26  ;;  %v484_v26 = vld [vmem:[%s2742_s28 + $0x2a0] sm:$0xff] }
 0x174   : > { %1549 = vmatmul.mubr.f32.gmra.mrb[74].mxu1 %v422_v27  ;;  %1328 = vmatprep.mubr.f32.mxu0 %v425_v28  ;;  %v486_v27 = vld [vmem:[%s2742_s28 + $0x2b0] sm:$0xff]  ;;  %v489_v28 = vld [vmem:[%s2742_s28 + $0x2c8] sm:$0xff] }
 0x175   : > { %1553 = vmatprep.mubr.f32.mxu1 %v427_v29 }
 0x177   : > { %1329 = vmatmul.mubr.f32.gmra.mrb[76].mxu0 %v424_v30  ;;  %v491_v30 = vld [vmem:[%s2742_s28 + $0x2d8] sm:$0xff] }
 0x178   : > { %1554 = vmatmul.mubr.f32.gmra.mrb[76].mxu1 %v426_v31  ;;  %1333 = vmatprep.mubr.f32.mxu0 %v429_v32 }
 0x179   : > { %1558 = vmatprep.mubr.f32.mxu1 %v431_v33 }
 0x17b   : > { %1334 = vmatmul.mubr.f32.gmra.mrb[78].mxu0 %v428_v34 }
 0x17c   : > { %1559 = vmatmul.mubr.f32.gmra.mrb[78].mxu1 %v430_v35  ;;  %1338 = vmatprep.mubr.f32.mxu0 %v433_v36  ;;  %v488_v35 = vld [vmem:[%s2742_s28 + $0x2c0] sm:$0xff]  ;;  %v490_v36 = vld [vmem:[%s2742_s28 + $0x2d0] sm:$0xff] }
 0x17d   : > { %1563 = vmatprep.mubr.f32.mxu1 %v435_v37  ;;  %v493_v37 = vld [vmem:[%s2742_s28 + $0x2e8] sm:$0xff] }
 0x17f   : > { %1339 = vmatmul.mubr.f32.gmra.mrb[80].mxu0 %v432_v38 }
 0x180   : > { %1564 = vmatmul.mubr.f32.gmra.mrb[80].mxu1 %v434_v39  ;;  %1343 = vmatprep.mubr.f32.mxu0 %v437_v40  ;;  %v495_v39 = vld [vmem:[%s2742_s28 + $0x2f8] sm:$0xff] }
 0x181   : > { %1568 = vmatprep.mubr.f32.mxu1 %v439_v41 }
 0x183   : > { %1344 = vmatmul.mubr.f32.gmra.mrb[82].mxu0 %v436_v42 }
 0x184   : > { %1569 = vmatmul.mubr.f32.gmra.mrb[82].mxu1 %v438_v43  ;;  %1348 = vmatprep.mubr.f32.mxu0 %v441_v44  ;;  %v492_v44 = vld [vmem:[%s2742_s28 + $0x2e0] sm:$0xff] }
 0x185   : > { %1573 = vmatprep.mubr.f32.mxu1 %v443_v45  ;;  %v494_v45 = vld [vmem:[%s2742_s28 + $0x2f0] sm:$0xff] }
 0x187   : > { %1349 = vmatmul.mubr.f32.gmra.mrb[84].mxu0 %v440_v46  ;;  %v497_v46 = vld [vmem:[%s2742_s28 + $0x308] sm:$0xff] }
 0x188   : > { %1574 = vmatmul.mubr.f32.gmra.mrb[84].mxu1 %v442_v47  ;;  %1353 = vmatprep.mubr.f32.mxu0 %v445_v48  ;;  %v499_v48 = vld [vmem:[%s2742_s28 + $0x318] sm:$0xff] }
 0x189   : > { %1578 = vmatprep.mubr.f32.mxu1 %v447_v49 }
 0x18b   : > { %1354 = vmatmul.mubr.f32.gmra.mrb[86].mxu0 %v444_v50 }
 0x18c   : > { %1579 = vmatmul.mubr.f32.gmra.mrb[86].mxu1 %v446_v51  ;;  %1358 = vmatprep.mubr.f32.mxu0 %v449_v52 }
 0x18d   : > { %1583 = vmatprep.mubr.f32.mxu1 %v451_v53  ;;  %v496_v53 = vld [vmem:[%s2742_s28 + $0x300] sm:$0xff] }
 0x18f   : > { %1359 = vmatmul.mubr.f32.gmra.mrb[88].mxu0 %v448_v54  ;;  %v498_v54 = vld [vmem:[%s2742_s28 + $0x310] sm:$0xff] }
 0x190   : > { %1584 = vmatmul.mubr.f32.gmra.mrb[88].mxu1 %v450_v55  ;;  %1363 = vmatprep.mubr.f32.mxu0 %v453_v56  ;;  %v501_v55 = vld [vmem:[%s2742_s28 + $0x328] sm:$0xff] }
 0x191   : > { %1588 = vmatprep.mubr.f32.mxu1 %v455_v57  ;;  %v503_v57 = vld [vmem:[%s2742_s28 + $0x338] sm:$0xff] }
 0x193   : > { %1364 = vmatmul.mubr.f32.gmra.mrb[90].mxu0 %v452_v58 }
 0x194   : > { %1589 = vmatmul.mubr.f32.gmra.mrb[90].mxu1 %v454_v59  ;;  %1368 = vmatprep.mubr.f32.mxu0 %v457_v60 }
 0x195   : > { %1593 = vmatprep.mubr.f32.mxu1 %v459_v61 }
 0x197   : > { %1369 = vmatmul.mubr.f32.gmra.mrb[92].mxu0 %v456_v62  ;;  %v500_v62 = vld [vmem:[%s2742_s28 + $0x320] sm:$0xff] }
 0x198   : > { %1594 = vmatmul.mubr.f32.gmra.mrb[92].mxu1 %v458_v63  ;;  %1373 = vmatprep.mubr.f32.mxu0 %v461_v1  ;;  %v502_v63 = vld [vmem:[%s2742_s28 + $0x330] sm:$0xff]  ;;  %v505_v1 = vld [vmem:[%s2742_s28 + $0x348] sm:$0xff] }
 0x199   : > { %1598 = vmatprep.mubr.f32.mxu1 %v463_v2 }
 0x19b   : > { %1374 = vmatmul.mubr.f32.gmra.mrb[94].mxu0 %v460_v3  ;;  %v507_v3 = vld [vmem:[%s2742_s28 + $0x358] sm:$0xff] }
 0x19c   : > { %1599 = vmatmul.mubr.f32.gmra.mrb[94].mxu1 %v462_v4  ;;  %1378 = vmatprep.mubr.f32.mxu0 %v465_v5 }
 0x19d   : > { %1603 = vmatprep.mubr.f32.mxu1 %v467_v6 }
 0x19f   : > { %1379 = vmatmul.mubr.f32.gmra.mrb[96].mxu0 %v464_v7 }
 0x1a0   : > { %1604 = vmatmul.mubr.f32.gmra.mrb[96].mxu1 %v466_v8  ;;  %1383 = vmatprep.mubr.f32.mxu0 %v469_v9  ;;  %v504_v8 = vld [vmem:[%s2742_s28 + $0x340] sm:$0xff]  ;;  %v506_v9 = vld [vmem:[%s2742_s28 + $0x350] sm:$0xff] }
 0x1a1   : > { %1608 = vmatprep.mubr.f32.mxu1 %v471_v10  ;;  %v509_v10 = vld [vmem:[%s2742_s28 + $0x368] sm:$0xff] }
 0x1a3   : > { %1384 = vmatmul.mubr.f32.gmra.mrb[98].mxu0 %v468_v11 }
 0x1a4   : > { %1609 = vmatmul.mubr.f32.gmra.mrb[98].mxu1 %v470_v0  ;;  %1388 = vmatprep.mubr.f32.mxu0 %v473_v12  ;;  %v511_v0 = vld [vmem:[%s2742_s28 + $0x378] sm:$0xff] }
 0x1a5   : > { %1613 = vmatprep.mubr.f32.mxu1 %v475_v13 }
 0x1a7   : > { %1389 = vmatmul.mubr.f32.gmra.mrb[100].mxu0 %v472_v14 }
 0x1a8   : > { %1614 = vmatmul.mubr.f32.gmra.mrb[100].mxu1 %v474_v15  ;;  %1393 = vmatprep.mubr.f32.mxu0 %v477_v16  ;;  %v508_v16 = vld [vmem:[%s2742_s28 + $0x360] sm:$0xff] }
 0x1a9   : > { %1618 = vmatprep.mubr.f32.mxu1 %v479_v17  ;;  %v510_v17 = vld [vmem:[%s2742_s28 + $0x370] sm:$0xff] }
 0x1ab   : > { %1394 = vmatmul.mubr.f32.gmra.mrb[102].mxu0 %v476_v18  ;;  %v513_v18 = vld [vmem:[%s2742_s28 + $0x388] sm:$0xff] }
 0x1ac   : > { %1619 = vmatmul.mubr.f32.gmra.mrb[102].mxu1 %v478_v19  ;;  %1398 = vmatprep.mubr.f32.mxu0 %v481_v20  ;;  %v515_v20 = vld [vmem:[%s2742_s28 + $0x398] sm:$0xff] }
 0x1ad   : > { %1623 = vmatprep.mubr.f32.mxu1 %v483_v21 }
 0x1af   : > { %1399 = vmatmul.mubr.f32.gmra.mrb[104].mxu0 %v480_v22 }
 0x1b0   : > { %1624 = vmatmul.mubr.f32.gmra.mrb[104].mxu1 %v482_v23  ;;  %1403 = vmatprep.mubr.f32.mxu0 %v485_v24 }
 0x1b1   : > { %1628 = vmatprep.mubr.f32.mxu1 %v487_v25  ;;  %v512_v25 = vld [vmem:[%s2742_s28 + $0x380] sm:$0xff] }
 0x1b2   : > { %v850_v29 = vpop.f32.mrb[0].mxu0 }
 0x1b3   : > { %v852_v31 = vpop.f32.mrb[1].mxu0  ;;  %v1075_v32 = vpop.f32.mrb[0].mxu1  ;;  %1404 = vmatmul.mubr.f32.gmra.mrb[106].mxu0 %v484_v26  ;;  %v514_v26 = vld [vmem:[%s2742_s28 + $0x390] sm:$0xff] }
 0x1b4   : > { %v3038_v33 = vadd.f32 %v1075_v32, %v850_v29  ;;  %v1077_v34 = vpop.f32.mrb[1].mxu1  ;;  %1629 = vmatmul.mubr.f32.gmra.mrb[106].mxu1 %v486_v27  ;;  %1408 = vmatprep.mubr.f32.mxu0 %v489_v28  ;;  %v517_v27 = vld [vmem:[%s2742_s28 + $0x3a8] sm:$0xff]  ;;  %v519_v29 = vld [vmem:[%s2742_s28 + $0x3b8] sm:$0xff] }
 0x1b5   : > { %1633 = vmatprep.mubr.f32.mxu1 %v491_v30 }
 0x1b6   : > { %v855_v38 = vpop.f32.mrb[2].mxu0 }
 0x1b7   : > { %v857_v40 = vpop.f32.mrb[3].mxu0  ;;  %v1080_v41 = vpop.f32.mrb[2].mxu1  ;;  %1409 = vmatmul.mubr.f32.gmra.mrb[108].mxu0 %v488_v35  ;;  %v516_v35 = vld [vmem:[%s2742_s28 + $0x3a0] sm:$0xff] }
 0x1b8   : > { %v3044_v42 = vadd.f32 %v1080_v41, %v855_v38  ;;  %v1082_v43 = vpop.f32.mrb[3].mxu1  ;;  %1634 = vmatmul.mubr.f32.gmra.mrb[108].mxu1 %v490_v36  ;;  %1413 = vmatprep.mubr.f32.mxu0 %v493_v37  ;;  %v518_v36 = vld [vmem:[%s2742_s28 + $0x3b0] sm:$0xff]  ;;  %v521_v37 = vld [vmem:[%s2742_s28 + $0x3c8] sm:$0xff] }
 0x1b9   : > { %1638 = vmatprep.mubr.f32.mxu1 %v495_v39  ;;  %v523_v39 = vld [vmem:[%s2742_s28 + $0x3d8] sm:$0xff] }
 0x1ba   : > { %v860_v47 = vpop.f32.mrb[4].mxu0 }
 0x1bb   : > { %v862_v49 = vpop.f32.mrb[5].mxu0  ;;  %v1085_v50 = vpop.f32.mrb[4].mxu1  ;;  %1414 = vmatmul.mubr.f32.gmra.mrb[110].mxu0 %v492_v44 }
 0x1bc   : > { %v3050_v51 = vadd.f32 %v1085_v50, %v860_v47  ;;  %v1087_v52 = vpop.f32.mrb[5].mxu1  ;;  %1639 = vmatmul.mubr.f32.gmra.mrb[110].mxu1 %v494_v45  ;;  %1418 = vmatprep.mubr.f32.mxu0 %v497_v46  ;;  %v520_v45 = vld [vmem:[%s2742_s28 + $0x3c0] sm:$0xff]  ;;  %v522_v46 = vld [vmem:[%s2742_s28 + $0x3d0] sm:$0xff]  ;;  %v525_v47 = vld [vmem:[%s2742_s28 + $0x3e8] sm:$0xff] }
 0x1bd   : > { %1643 = vmatprep.mubr.f32.mxu1 %v499_v48  ;;  %v527_v49 = vld [vmem:[%s2742_s28 + $0x3f8] sm:$0xff] }
 0x1be   : > { %v865_v56 = vpop.f32.mrb[6].mxu0 }
 0x1bf   : > { %v867_v58 = vpop.f32.mrb[7].mxu0  ;;  %v1090_v59 = vpop.f32.mrb[6].mxu1  ;;  %1419 = vmatmul.mubr.f32.gmra.mrb[112].mxu0 %v496_v53 }
 0x1c0   : > { %v3056_v60 = vadd.f32 %v1090_v59, %v865_v56  ;;  %v1092_v61 = vpop.f32.mrb[7].mxu1  ;;  %1644 = vmatmul.mubr.f32.gmra.mrb[112].mxu1 %v498_v54  ;;  %1423 = vmatprep.mubr.f32.mxu0 %v501_v55  ;;  %v524_v55 = vld [vmem:[%s2742_s28 + $0x3e0] sm:$0xff]  ;;  %v526_v56 = vld [vmem:[%s2742_s28 + $0x3f0] sm:$0xff] }
 0x1c1   : > { %1648 = vmatprep.mubr.f32.mxu1 %v503_v57 }
 0x1c2   : > { %v870_v2 = vpop.f32.mrb[8].mxu0 }
 0x1c3   : > { %v872_v4 = vpop.f32.mrb[9].mxu0  ;;  %v1095_v5 = vpop.f32.mrb[8].mxu1  ;;  %1424 = vmatmul.mubr.f32.gmra.mrb[114].mxu0 %v500_v62 }
 0x1c4   : > { %v3062_v6 = vadd.f32 %v1095_v5, %v870_v2  ;;  %v1097_v7 = vpop.f32.mrb[9].mxu1  ;;  %1649 = vmatmul.mubr.f32.gmra.mrb[114].mxu1 %v502_v63  ;;  %1428 = vmatprep.mubr.f32.mxu0 %v505_v1 }
 0x1c5   : > { %1653 = vmatprep.mubr.f32.mxu1 %v507_v3 }
 0x1c6   : > { %v875_v11 = vpop.f32.mrb[10].mxu0 }
 0x1c7   : > { %v877_v12 = vpop.f32.mrb[11].mxu0  ;;  %v1100_v13 = vpop.f32.mrb[10].mxu1  ;;  %1429 = vmatmul.mubr.f32.gmra.mrb[116].mxu0 %v504_v8 }
 0x1c8   : > { %v3068_v14 = vadd.f32 %v1100_v13, %v875_v11  ;;  %v1102_v15 = vpop.f32.mrb[11].mxu1  ;;  %1654 = vmatmul.mubr.f32.gmra.mrb[116].mxu1 %v506_v9  ;;  %1433 = vmatprep.mubr.f32.mxu0 %v509_v10 }
 0x1c9   : > { %1658 = vmatprep.mubr.f32.mxu1 %v511_v0 }
 0x1ca   : > { %v880_v19 = vpop.f32.mrb[12].mxu0 }
 0x1cb   : > { %v882_v21 = vpop.f32.mrb[13].mxu0  ;;  %v1105_v22 = vpop.f32.mrb[12].mxu1  ;;  %1434 = vmatmul.mubr.f32.gmra.mrb[118].mxu0 %v508_v16 }
 0x1cc   : > { %v3074_v23 = vadd.f32 %v1105_v22, %v880_v19  ;;  %v1107_v24 = vpop.f32.mrb[13].mxu1  ;;  %1659 = vmatmul.mubr.f32.gmra.mrb[118].mxu1 %v510_v17  ;;  %1438 = vmatprep.mubr.f32.mxu0 %v513_v18 }
 0x1cd   : > { %1663 = vmatprep.mubr.f32.mxu1 %v515_v20 }
 0x1ce   : > { %v885_v28 = vpop.f32.mrb[14].mxu0 }
 0x1cf   : > { %v887_v30 = vpop.f32.mrb[15].mxu0  ;;  %v1110_v31 = vpop.f32.mrb[14].mxu1  ;;  %1439 = vmatmul.mubr.f32.gmra.mrb[120].mxu0 %v512_v25 }
 0x1d0   : > { %v3080_v32 = vadd.f32 %v1110_v31, %v885_v28  ;;  %v1112_v34 = vpop.f32.mrb[15].mxu1  ;;  %1664 = vmatmul.mubr.f32.gmra.mrb[120].mxu1 %v514_v26  ;;  %1443 = vmatprep.mubr.f32.mxu0 %v517_v27 }
 0x1d1   : > { %1668 = vmatprep.mubr.f32.mxu1 %v519_v29 }
 0x1d2   : > { %v890_v38 = vpop.f32.mrb[16].mxu0 }
 0x1d3   : > { %v892_v40 = vpop.f32.mrb[17].mxu0  ;;  %v1115_v41 = vpop.f32.mrb[16].mxu1  ;;  %1444 = vmatmul.mubr.f32.gmra.mrb[122].mxu0 %v516_v35 }
 0x1d4   : > { %v3086_v43 = vadd.f32 %v1115_v41, %v890_v38  ;;  %v1117_v44 = vpop.f32.mrb[17].mxu1  ;;  %1669 = vmatmul.mubr.f32.gmra.mrb[122].mxu1 %v518_v36  ;;  %1448 = vmatprep.mubr.f32.mxu0 %v521_v37 }
 0x1d5   : > { %1673 = vmatprep.mubr.f32.mxu1 %v523_v39 }
 0x1d6   : > { %v895_v48 = vpop.f32.mrb[18].mxu0 }
 0x1d7   : > { %v897_v50 = vpop.f32.mrb[19].mxu0  ;;  %v1120_v52 = vpop.f32.mrb[18].mxu1  ;;  %1449 = vmatmul.mubr.f32.gmra.mrb[124].mxu0 %v520_v45 }
 0x1d8   : > { %v3092_v53 = vadd.f32 %v1120_v52, %v895_v48  ;;  %v1122_v54 = vpop.f32.mrb[19].mxu1  ;;  %1674 = vmatmul.mubr.f32.gmra.mrb[124].mxu1 %v522_v46  ;;  %1453 = vmatprep.mubr.f32.mxu0 %v525_v47 }
 0x1d9   : > { %1678 = vmatprep.mubr.f32.mxu1 %v527_v49 }
 0x1da   : > { %v900_v57 = vpop.f32.mrb[20].mxu0 }
 0x1db   : > { %v902_v58 = vpop.f32.mrb[21].mxu0  ;;  %v1125_v59 = vpop.f32.mrb[20].mxu1  ;;  %1454 = vmatmul.mubr.f32.gmra.mrb[126].mxu0 %v524_v55 }
 0x1dc   : > { %v3096_v61 = vadd.f32 %v1125_v59, %v900_v57  ;;  %v1127_v62 = vpop.f32.mrb[21].mxu1  ;;  %1679 = vmatmul.mubr.f32.gmra.mrb[126].mxu1 %v526_v56 }
 0x1de   : > { %v905_v63 = vpop.f32.mrb[22].mxu0 }
 0x1df   : > { %v907_v1 = vpop.f32.mrb[23].mxu0  ;;  %v1130_v2 = vpop.f32.mrb[22].mxu1 }
 0x1e0   : > { %v3098_v3 = vadd.f32 %v1130_v2, %v905_v63  ;;  %v1132_v4 = vpop.f32.mrb[23].mxu1 }
 0x1e2   : > { %v910_v5 = vpop.f32.mrb[24].mxu0 }
 0x1e3   : > { %v912_v7 = vpop.f32.mrb[25].mxu0  ;;  %v1135_v8 = vpop.f32.mrb[24].mxu1 }
 0x1e4   : > { %v3100_v9 = vadd.f32 %v1135_v8, %v910_v5  ;;  %v1137_v10 = vpop.f32.mrb[25].mxu1 }
 0x1e6   : > { %v915_v11 = vpop.f32.mrb[26].mxu0 }
 0x1e7   : > { %v917_v0 = vpop.f32.mrb[27].mxu0  ;;  %v1140_v12 = vpop.f32.mrb[26].mxu1 }
 0x1e8   : > { %v3102_v13 = vadd.f32 %v1140_v12, %v915_v11  ;;  %v1142_v15 = vpop.f32.mrb[27].mxu1 }
 0x1ea   : > { %v920_v16 = vpop.f32.mrb[28].mxu0 }
 0x1eb   : > { %v922_v17 = vpop.f32.mrb[29].mxu0  ;;  %v1145_v18 = vpop.f32.mrb[28].mxu1 }
 0x1ec   : > { %v3104_v19 = vadd.f32 %v1145_v18, %v920_v16  ;;  %v1147_v20 = vpop.f32.mrb[29].mxu1 }
 0x1ee   : > { %v925_v21 = vpop.f32.mrb[30].mxu0 }
 0x1ef   : > { %v927_v22 = vpop.f32.mrb[31].mxu0  ;;  %v1150_v24 = vpop.f32.mrb[30].mxu1 }
 0x1f0   : > { %v3106_v25 = vadd.f32 %v1150_v24, %v925_v21  ;;  %v1152_v26 = vpop.f32.mrb[31].mxu1 }
 0x1f2   : > { %v930_v27 = vpop.f32.mrb[32].mxu0 }
 0x1f3   : > { %v932_v28 = vpop.f32.mrb[33].mxu0  ;;  %v1155_v29 = vpop.f32.mrb[32].mxu1 }
 0x1f4   : > { %v3108_v30 = vadd.f32 %v1155_v29, %v930_v27  ;;  %v1157_v31 = vpop.f32.mrb[33].mxu1 }
 0x1f6   : > { %v935_v34 = vpop.f32.mrb[34].mxu0 }
 0x1f7   : > { %v937_v35 = vpop.f32.mrb[35].mxu0  ;;  %v1160_v36 = vpop.f32.mrb[34].mxu1 }
 0x1f8   : > { %v3110_v37 = vadd.f32 %v1160_v36, %v935_v34  ;;  %v1162_v38 = vpop.f32.mrb[35].mxu1 }
 0x1fa   : > { %v940_v39 = vpop.f32.mrb[36].mxu0 }
 0x1fb   : > { %v942_v40 = vpop.f32.mrb[37].mxu0  ;;  %v1165_v41 = vpop.f32.mrb[36].mxu1 }
 0x1fc   : > { %v3112_v44 = vadd.f32 %v1165_v41, %v940_v39  ;;  %v1167_v45 = vpop.f32.mrb[37].mxu1 }
 0x1fe   : > { %v945_v46 = vpop.f32.mrb[38].mxu0 }
 0x1ff   : > { %v947_v47 = vpop.f32.mrb[39].mxu0  ;;  %v1170_v48 = vpop.f32.mrb[38].mxu1 }
 0x200   : > { %v3114_v49 = vadd.f32 %v1170_v48, %v945_v46  ;;  %v1172_v50 = vpop.f32.mrb[39].mxu1 }
 0x202   : > { %v950_v52 = vpop.f32.mrb[40].mxu0 }
 0x203   : > { %v952_v54 = vpop.f32.mrb[41].mxu0  ;;  %v1175_v55 = vpop.f32.mrb[40].mxu1 }
 0x204   : > { %v3116_v56 = vadd.f32 %v1175_v55, %v950_v52  ;;  %v1177_v57 = vpop.f32.mrb[41].mxu1 }
 0x206   : > { %v955_v58 = vpop.f32.mrb[42].mxu0 }
 0x207   : > { %v957_v59 = vpop.f32.mrb[43].mxu0  ;;  %v1180_v62 = vpop.f32.mrb[42].mxu1 }
 0x208   : > { %v3118_v63 = vadd.f32 %v1180_v62, %v955_v58  ;;  %v1182_v1 = vpop.f32.mrb[43].mxu1 }
 0x20a   : > { %v960_v2 = vpop.f32.mrb[44].mxu0 }
 0x20b   : > { %v962_v4 = vpop.f32.mrb[45].mxu0  ;;  %v1185_v5 = vpop.f32.mrb[44].mxu1 }
 0x20c   : > { %v3120_v7 = vadd.f32 %v1185_v5, %v960_v2  ;;  %v1187_v8 = vpop.f32.mrb[45].mxu1 }
 0x20e   : > { %v965_v10 = vpop.f32.mrb[46].mxu0 }
 0x20f   : > { %v967_v11 = vpop.f32.mrb[47].mxu0  ;;  %v1190_v0 = vpop.f32.mrb[46].mxu1 }
 0x210   : > { %v3122_v12 = vadd.f32 %v1190_v0, %v965_v10  ;;  %v1192_v15 = vpop.f32.mrb[47].mxu1 }
 0x212   : > { %v970_v16 = vpop.f32.mrb[48].mxu0 }
 0x213   : > { %v972_v17 = vpop.f32.mrb[49].mxu0  ;;  %v1195_v18 = vpop.f32.mrb[48].mxu1 }
 0x214   : > { %v3124_v20 = vadd.f32 %v1195_v18, %v970_v16  ;;  %v1197_v21 = vpop.f32.mrb[49].mxu1 }
 0x216   : > { %v975_v22 = vpop.f32.mrb[50].mxu0 }
 0x217   : > { %v977_v24 = vpop.f32.mrb[51].mxu0  ;;  %v1200_v26 = vpop.f32.mrb[50].mxu1 }
 0x218   : > { %v3126_v27 = vadd.f32 %v1200_v26, %v975_v22  ;;  %v1202_v28 = vpop.f32.mrb[51].mxu1  ;;  %v3145_v22 = vld [vmem:[%s3304_s4] ss:$0 sm:$0xff] }
 0x21a   : > { %v980_v29 = vpop.f32.mrb[52].mxu0 }
 0x21b   : > { %v982_v31 = vpop.f32.mrb[53].mxu0  ;;  %v1205_v34 = vpop.f32.mrb[52].mxu1 }
 0x21c   : > { %v3128_v35 = vadd.f32 %v1205_v34, %v980_v29  ;;  %v1207_v36 = vpop.f32.mrb[53].mxu1 }
 0x21e   : > { %v985_v38 = vpop.f32.mrb[54].mxu0 }
 0x21f   : > { %v987_v39 = vpop.f32.mrb[55].mxu0  ;;  %v1210_v40 = vpop.f32.mrb[54].mxu1 }
 0x220   : > { %v3130_v41 = vadd.f32 %v1210_v40, %v985_v38  ;;  %v1212_v45 = vpop.f32.mrb[55].mxu1 }
 0x222   : > { %v990_v46 = vpop.f32.mrb[56].mxu0 }
 0x223   : > { %v992_v47 = vpop.f32.mrb[57].mxu0  ;;  %v1215_v48 = vpop.f32.mrb[56].mxu1 }
 0x224   : > { %v3132_v50 = vadd.f32 %v1215_v48, %v990_v46  ;;  %v1217_v52 = vpop.f32.mrb[57].mxu1 }
 0x226   : > { %v995_v54 = vpop.f32.mrb[58].mxu0 }
 0x227   : > { %v997_v55 = vpop.f32.mrb[59].mxu0  ;;  %v1220_v57 = vpop.f32.mrb[58].mxu1 }
 0x228   : > { %v3134_v58 = vadd.f32 %v1220_v57, %v995_v54  ;;  %v1222_v59 = vpop.f32.mrb[59].mxu1 }
 0x22a   : > { %v1000_v62 = vpop.f32.mrb[60].mxu0 }
 0x22b   : > { %v1002_v1 = vpop.f32.mrb[61].mxu0  ;;  %v1225_v2 = vpop.f32.mrb[60].mxu1 }
 0x22c   : > { %v3136_v4 = vadd.f32 %v1225_v2, %v1000_v62  ;;  %v1227_v5 = vpop.f32.mrb[61].mxu1 }
 0x22e   : > { %v1005_v8 = vpop.f32.mrb[62].mxu0 }
 0x22f   : > { %v1007_v10 = vpop.f32.mrb[63].mxu0  ;;  %v1230_v11 = vpop.f32.mrb[62].mxu1 }
 0x230   : > { %v3138_v0 = vadd.f32 %v1230_v11, %v1005_v8  ;;  %v1232_v15 = vpop.f32.mrb[63].mxu1 }
 0x232   : > { %v1300_v16 = vpop.f32.mrb[64].mxu0 }
 0x233   : > { %v1301_v17 = vadd.f32 %v1300_v16, %v3038_v33  ;;  %v1302_v18 = vpop.f32.mrb[65].mxu0  ;;  %v1525_v21 = vpop.f32.mrb[64].mxu1 }
 0x234   : > { %v1527_v24 = vpop.f32.mrb[65].mxu1 }
 0x235   : > { %v1526_v26 = vadd.f32 %v1525_v21, %v1301_v17 }
 0x236   : > { %v1305_v28 = vpop.f32.mrb[66].mxu0 }
 0x237   : > { %v1716_v29 = vadd.f32 %v3145_v22, %v1526_v26  ;;  %v1306_v31 = vadd.f32 %v1305_v28, %v3044_v42  ;;  %v1307_v34 = vpop.f32.mrb[67].mxu0  ;;  %v1530_v36 = vpop.f32.mrb[66].mxu1 }
 0x238   : > { %v1532_v38 = vpop.f32.mrb[67].mxu1 }
 0x239   : > { %1748 = vst [vmem:[%s3149_s9] sm:$0xff] %v1716_v29  ;;  %v1531_v33 = vadd.f32 %v1530_v36, %v1306_v31 }
 0x23a   : > { %v1310_v39 = vpop.f32.mrb[68].mxu0 }
 0x23b   : > { %v1717_v40 = vadd.f32 %v3145_v22, %v1531_v33  ;;  %v1311_v45 = vadd.f32 %v1310_v39, %v3050_v51  ;;  %v1312_v46 = vpop.f32.mrb[69].mxu0  ;;  %v1535_v47 = vpop.f32.mrb[68].mxu1 }
 0x23c   : > { %v1537_v48 = vpop.f32.mrb[69].mxu1 }
 0x23d   : > { %1749 = vst [vmem:[%s3149_s9 + $0x8] sm:$0xff] %v1717_v40  ;;  %v1536_v42 = vadd.f32 %v1535_v47, %v1311_v45 }
 0x23e   : > { %v1315_v52 = vpop.f32.mrb[70].mxu0 }
 0x23f   : > { %v1718_v54 = vadd.f32 %v3145_v22, %v1536_v42  ;;  %v1316_v55 = vadd.f32 %v1315_v52, %v3056_v60  ;;  %v1317_v57 = vpop.f32.mrb[71].mxu0  ;;  %v1540_v59 = vpop.f32.mrb[70].mxu1 }
 0x240   : > { %v1542_v62 = vpop.f32.mrb[71].mxu1 }
 0x241   : > { %1750 = vst [vmem:[%s3149_s9 + $0x10] sm:$0xff] %v1718_v54  ;;  %v1541_v1 = vadd.f32 %v1540_v59, %v1316_v55 }
 0x242   : > { %v1320_v2 = vpop.f32.mrb[72].mxu0 }
 0x243   : > { %v1719_v51 = vadd.f32 %v3145_v22, %v1541_v1  ;;  %v1321_v5 = vadd.f32 %v1320_v2, %v3062_v6  ;;  %v1322_v8 = vpop.f32.mrb[73].mxu0  ;;  %v1545_v10 = vpop.f32.mrb[72].mxu1 }
 0x244   : > { %v1547_v11 = vpop.f32.mrb[73].mxu1 }
 0x245   : > { %1751 = vst [vmem:[%s3149_s9 + $0x18] sm:$0xff] %v1719_v51  ;;  %v1546_v15 = vadd.f32 %v1545_v10, %v1321_v5 }
 0x246   : > { %v1325_v16 = vpop.f32.mrb[74].mxu0 }
 0x247   : > { %v1720_v60 = vadd.f32 %v3145_v22, %v1546_v15  ;;  %v1326_v17 = vadd.f32 %v1325_v16, %v3068_v14  ;;  %v1327_v18 = vpop.f32.mrb[75].mxu0  ;;  %v1550_v21 = vpop.f32.mrb[74].mxu1 }
 0x248   : > { %v1552_v24 = vpop.f32.mrb[75].mxu1 }
 0x249   : > { %1752 = vst [vmem:[%s3149_s9 + $0x20] sm:$0xff] %v1720_v60  ;;  %v1551_v26 = vadd.f32 %v1550_v21, %v1326_v17 }
 0x24a   : > { %v1330_v28 = vpop.f32.mrb[76].mxu0 }
 0x24b   : > { %v1721_v6 = vadd.f32 %v3145_v22, %v1551_v26  ;;  %v1331_v29 = vadd.f32 %v1330_v28, %v3074_v23  ;;  %v1332_v31 = vpop.f32.mrb[77].mxu0  ;;  %v1555_v34 = vpop.f32.mrb[76].mxu1 }
 0x24c   : > { %v1557_v36 = vpop.f32.mrb[77].mxu1 }
 0x24d   : > { %1753 = vst [vmem:[%s3149_s9 + $0x28] sm:$0xff] %v1721_v6  ;;  %v1556_v38 = vadd.f32 %v1555_v34, %v1331_v29 }
 0x24e   : > { %v1335_v33 = vpop.f32.mrb[78].mxu0 }
 0x24f   : > { %v1722_v14 = vadd.f32 %v3145_v22, %v1556_v38  ;;  %v1336_v39 = vadd.f32 %v1335_v33, %v3080_v32  ;;  %v1337_v40 = vpop.f32.mrb[79].mxu0  ;;  %v1560_v45 = vpop.f32.mrb[78].mxu1 }
 0x250   : > { %v1562_v46 = vpop.f32.mrb[79].mxu1 }
 0x251   : > { %1754 = vst [vmem:[%s3149_s9 + $0x30] sm:$0xff] %v1722_v14  ;;  %v1561_v47 = vadd.f32 %v1560_v45, %v1336_v39 }
 0x252   : > { %v1340_v48 = vpop.f32.mrb[80].mxu0 }
 0x253   : > { %v1723_v23 = vadd.f32 %v3145_v22, %v1561_v47  ;;  %v1341_v42 = vadd.f32 %v1340_v48, %v3086_v43  ;;  %v1342_v52 = vpop.f32.mrb[81].mxu0  ;;  %v1565_v54 = vpop.f32.mrb[80].mxu1 }
 0x254   : > { %v1567_v55 = vpop.f32.mrb[81].mxu1 }
 0x255   : > { %1755 = vst [vmem:[%s3149_s9 + $0x38] sm:$0xff] %v1723_v23  ;;  %v1566_v57 = vadd.f32 %v1565_v54, %v1341_v42 }
 0x256   : > { %v1345_v59 = vpop.f32.mrb[82].mxu0 }
 0x257   : > { %v1724_v32 = vadd.f32 %v3145_v22, %v1566_v57  ;;  %v1346_v62 = vadd.f32 %v1345_v59, %v3092_v53  ;;  %v1347_v1 = vpop.f32.mrb[83].mxu0  ;;  %v1570_v2 = vpop.f32.mrb[82].mxu1 }
 0x258   : > { %v1572_v51 = vpop.f32.mrb[83].mxu1 }
 0x259   : > { %1756 = vst [vmem:[%s3149_s9 + $0x40] sm:$0xff] %v1724_v32  ;;  %v1571_v5 = vadd.f32 %v1570_v2, %v1346_v62 }
 0x25a   : > { %v1350_v8 = vpop.f32.mrb[84].mxu0 }
 0x25b   : > { %v1725_v43 = vadd.f32 %v3145_v22, %v1571_v5  ;;  %v1351_v10 = vadd.f32 %v1350_v8, %v3096_v61  ;;  %v1352_v11 = vpop.f32.mrb[85].mxu0  ;;  %v1575_v15 = vpop.f32.mrb[84].mxu1 }
 0x25c   : > { %v1577_v16 = vpop.f32.mrb[85].mxu1 }
 0x25d   : > { %1757 = vst [vmem:[%s3149_s9 + $0x48] sm:$0xff] %v1725_v43  ;;  %v1576_v60 = vadd.f32 %v1575_v15, %v1351_v10 }
 0x25e   : > { %v1355_v17 = vpop.f32.mrb[86].mxu0 }
 0x25f   : > { %v1726_v53 = vadd.f32 %v3145_v22, %v1576_v60  ;;  %v1356_v18 = vadd.f32 %v1355_v17, %v3098_v3  ;;  %v1357_v21 = vpop.f32.mrb[87].mxu0  ;;  %v1580_v24 = vpop.f32.mrb[86].mxu1 }
 0x260   : > { %v1582_v26 = vpop.f32.mrb[87].mxu1 }
 0x261   : > { %1758 = vst [vmem:[%s3149_s9 + $0x50] sm:$0xff] %v1726_v53  ;;  %v1581_v28 = vadd.f32 %v1580_v24, %v1356_v18 }
 0x262   : > { %v1360_v6 = vpop.f32.mrb[88].mxu0 }
 0x263   : > { %v1727_v61 = vadd.f32 %v3145_v22, %v1581_v28  ;;  %v1361_v29 = vadd.f32 %v1360_v6, %v3100_v9  ;;  %v1362_v31 = vpop.f32.mrb[89].mxu0  ;;  %v1585_v34 = vpop.f32.mrb[88].mxu1 }
 0x264   : > { %v1587_v36 = vpop.f32.mrb[89].mxu1 }
 0x265   : > { %1759 = vst [vmem:[%s3149_s9 + $0x58] sm:$0xff] %v1727_v61  ;;  %v1586_v38 = vadd.f32 %v1585_v34, %v1361_v29 }
 0x266   : > { %v1365_v33 = vpop.f32.mrb[90].mxu0 }
 0x267   : > { %v1728_v3 = vadd.f32 %v3145_v22, %v1586_v38  ;;  %v1366_v14 = vadd.f32 %v1365_v33, %v3102_v13  ;;  %v1367_v39 = vpop.f32.mrb[91].mxu0  ;;  %v1590_v40 = vpop.f32.mrb[90].mxu1 }
 0x268   : > { %v1592_v45 = vpop.f32.mrb[91].mxu1 }
 0x269   : > { %1760 = vst [vmem:[%s3149_s9 + $0x60] sm:$0xff] %v1728_v3  ;;  %v1591_v46 = vadd.f32 %v1590_v40, %v1366_v14 }
 0x26a   : > { %v1370_v47 = vpop.f32.mrb[92].mxu0 }
 0x26b   : > { %v1729_v9 = vadd.f32 %v3145_v22, %v1591_v46  ;;  %v1371_v48 = vadd.f32 %v1370_v47, %v3104_v19  ;;  %v1372_v23 = vpop.f32.mrb[93].mxu0  ;;  %v1595_v42 = vpop.f32.mrb[92].mxu1 }
 0x26c   : > { %v1597_v52 = vpop.f32.mrb[93].mxu1 }
 0x26d   : > { %1761 = vst [vmem:[%s3149_s9 + $0x68] sm:$0xff] %v1729_v9  ;;  %v1596_v54 = vadd.f32 %v1595_v42, %v1371_v48 }
 0x26e   : > { %v1375_v55 = vpop.f32.mrb[94].mxu0 }
 0x26f   : > { %v1730_v13 = vadd.f32 %v3145_v22, %v1596_v54  ;;  %v1376_v57 = vadd.f32 %v1375_v55, %v3106_v25  ;;  %v1377_v59 = vpop.f32.mrb[95].mxu0  ;;  %v1600_v32 = vpop.f32.mrb[94].mxu1 }
 0x270   : > { %v1602_v62 = vpop.f32.mrb[95].mxu1 }
 0x271   : > { %1762 = vst [vmem:[%s3149_s9 + $0x70] sm:$0xff] %v1730_v13  ;;  %v1601_v1 = vadd.f32 %v1600_v32, %v1376_v57 }
 0x272   : > { %v1380_v2 = vpop.f32.mrb[96].mxu0 }
 0x273   : > { %v1731_v19 = vadd.f32 %v3145_v22, %v1601_v1  ;;  %v1381_v51 = vadd.f32 %v1380_v2, %v3108_v30  ;;  %v1382_v5 = vpop.f32.mrb[97].mxu0  ;;  %v1605_v8 = vpop.f32.mrb[96].mxu1 }
 0x274   : > { %v1607_v43 = vpop.f32.mrb[97].mxu1 }
 0x275   : > { %1763 = vst [vmem:[%s3149_s9 + $0x78] sm:$0xff] %v1731_v19  ;;  %v1606_v10 = vadd.f32 %v1605_v8, %v1381_v51 }
 0x276   : > { %v1385_v11 = vpop.f32.mrb[98].mxu0 }
 0x277   : > { %v1732_v25 = vadd.f32 %v3145_v22, %v1606_v10  ;;  %v1386_v15 = vadd.f32 %v1385_v11, %v3110_v37  ;;  %v1387_v16 = vpop.f32.mrb[99].mxu0  ;;  %v1610_v60 = vpop.f32.mrb[98].mxu1 }
 0x278   : > { %v1612_v17 = vpop.f32.mrb[99].mxu1 }
 0x279   : > { %1764 = vst [vmem:[%s3149_s9 + $0x80] sm:$0xff] %v1732_v25  ;;  %v1611_v53 = vadd.f32 %v1610_v60, %v1386_v15 }
 0x27a   : > { %v1390_v18 = vpop.f32.mrb[100].mxu0 }
 0x27b   : > { %v1733_v30 = vadd.f32 %v3145_v22, %v1611_v53  ;;  %v1391_v21 = vadd.f32 %v1390_v18, %v3112_v44  ;;  %v1392_v24 = vpop.f32.mrb[101].mxu0  ;;  %v1615_v26 = vpop.f32.mrb[100].mxu1 }
 0x27c   : > { %v1617_v28 = vpop.f32.mrb[101].mxu1 }
 0x27d   : > { %1765 = vst [vmem:[%s3149_s9 + $0x88] sm:$0xff] %v1733_v30  ;;  %v1616_v6 = vadd.f32 %v1615_v26, %v1391_v21 }
 0x27e   : > { %v1395_v61 = vpop.f32.mrb[102].mxu0 }
 0x27f   : > { %v1734_v37 = vadd.f32 %v3145_v22, %v1616_v6  ;;  %v1396_v29 = vadd.f32 %v1395_v61, %v3114_v49  ;;  %v1397_v31 = vpop.f32.mrb[103].mxu0  ;;  %v1620_v34 = vpop.f32.mrb[102].mxu1 }
 0x280   : > { %v1622_v36 = vpop.f32.mrb[103].mxu1 }
 0x281   : > { %1766 = vst [vmem:[%s3149_s9 + $0x90] sm:$0xff] %v1734_v37  ;;  %v1621_v38 = vadd.f32 %v1620_v34, %v1396_v29 }
 0x282   : > { %v1400_v33 = vpop.f32.mrb[104].mxu0 }
 0x283   : > { %v1735_v44 = vadd.f32 %v3145_v22, %v1621_v38  ;;  %v1401_v3 = vadd.f32 %v1400_v33, %v3116_v56  ;;  %v1402_v14 = vpop.f32.mrb[105].mxu0  ;;  %v1625_v39 = vpop.f32.mrb[104].mxu1 }
 0x284   : > { %v1627_v40 = vpop.f32.mrb[105].mxu1 }
 0x285   : > { %1767 = vst [vmem:[%s3149_s9 + $0x98] sm:$0xff] %v1735_v44  ;;  %v1626_v45 = vadd.f32 %v1625_v39, %v1401_v3 }
 0x286   : > { %v1405_v46 = vpop.f32.mrb[106].mxu0 }
 0x287   : > { %v1736_v49 = vadd.f32 %v3145_v22, %v1626_v45  ;;  %v1406_v47 = vadd.f32 %v1405_v46, %v3118_v63  ;;  %v1407_v9 = vpop.f32.mrb[107].mxu0  ;;  %v1630_v48 = vpop.f32.mrb[106].mxu1 }
 0x288   : > { %v1632_v23 = vpop.f32.mrb[107].mxu1 }
 0x289   : > { %1768 = vst [vmem:[%s3149_s9 + $0xa0] sm:$0xff] %v1736_v49  ;;  %v1631_v42 = vadd.f32 %v1630_v48, %v1406_v47 }
 0x28a   : > { %v1410_v52 = vpop.f32.mrb[108].mxu0 }
 0x28b   : > { %v1737_v56 = vadd.f32 %v3145_v22, %v1631_v42  ;;  %v1411_v54 = vadd.f32 %v1410_v52, %v3120_v7  ;;  %v1412_v55 = vpop.f32.mrb[109].mxu0  ;;  %v1635_v13 = vpop.f32.mrb[108].mxu1 }
 0x28c   : > { %v1637_v57 = vpop.f32.mrb[109].mxu1 }
 0x28d   : > { %1769 = vst [vmem:[%s3149_s9 + $0xa8] sm:$0xff] %v1737_v56  ;;  %v1636_v59 = vadd.f32 %v1635_v13, %v1411_v54 }
 0x28e   : > { %v1415_v32 = vpop.f32.mrb[110].mxu0 }
 0x28f   : > { %v1738_v63 = vadd.f32 %v3145_v22, %v1636_v59  ;;  %v1416_v62 = vadd.f32 %v1415_v32, %v3122_v12  ;;  %v1417_v1 = vpop.f32.mrb[111].mxu0  ;;  %v1640_v2 = vpop.f32.mrb[110].mxu1 }
 0x290   : > { %v1642_v19 = vpop.f32.mrb[111].mxu1 }
 0x291   : > { %1770 = vst [vmem:[%s3149_s9 + $0xb0] sm:$0xff] %v1738_v63  ;;  %v1641_v51 = vadd.f32 %v1640_v2, %v1416_v62 }
 0x292   : > { %v1420_v5 = vpop.f32.mrb[112].mxu0 }
 0x293   : > { %v1739_v7 = vadd.f32 %v3145_v22, %v1641_v51  ;;  %v1421_v8 = vadd.f32 %v1420_v5, %v3124_v20  ;;  %v1422_v43 = vpop.f32.mrb[113].mxu0  ;;  %v1645_v10 = vpop.f32.mrb[112].mxu1 }
 0x294   : > { %v1647_v11 = vpop.f32.mrb[113].mxu1 }
 0x295   : > { %1771 = vst [vmem:[%s3149_s9 + $0xb8] sm:$0xff] %v1739_v7  ;;  %v1646_v25 = vadd.f32 %v1645_v10, %v1421_v8 }
 0x296   : > { %v1425_v15 = vpop.f32.mrb[114].mxu0 }
 0x297   : > { %v1740_v12 = vadd.f32 %v3145_v22, %v1646_v25  ;;  %v1426_v16 = vadd.f32 %v1425_v15, %v3126_v27  ;;  %v1427_v60 = vpop.f32.mrb[115].mxu0  ;;  %v1650_v17 = vpop.f32.mrb[114].mxu1 }
 0x298   : > { %v1652_v53 = vpop.f32.mrb[115].mxu1 }
 0x299   : > { %1772 = vst [vmem:[%s3149_s9 + $0xc0] sm:$0xff] %v1740_v12  ;;  %v1651_v18 = vadd.f32 %v1650_v17, %v1426_v16 }
 0x29a   : > { %v1430_v30 = vpop.f32.mrb[116].mxu0 }
 0x29b   : > { %v1741_v20 = vadd.f32 %v3145_v22, %v1651_v18  ;;  %v1431_v21 = vadd.f32 %v1430_v30, %v3128_v35  ;;  %v1432_v24 = vpop.f32.mrb[117].mxu0  ;;  %v1655_v26 = vpop.f32.mrb[116].mxu1 }
 0x29c   : > { %v1657_v28 = vpop.f32.mrb[117].mxu1 }
 0x29d   : > { %1773 = vst [vmem:[%s3149_s9 + $0xc8] sm:$0xff] %v1741_v20  ;;  %v1656_v6 = vadd.f32 %v1655_v26, %v1431_v21 }
 0x29e   : > { %v1435_v61 = vpop.f32.mrb[118].mxu0 }
 0x29f   : > { %v1742_v27 = vadd.f32 %v3145_v22, %v1656_v6  ;;  %v1436_v37 = vadd.f32 %v1435_v61, %v3130_v41  ;;  %v1437_v29 = vpop.f32.mrb[119].mxu0  ;;  %v1660_v31 = vpop.f32.mrb[118].mxu1 }
 0x2a0   : > { %v1662_v34 = vpop.f32.mrb[119].mxu1 }
 0x2a1   : > { %1774 = vst [vmem:[%s3149_s9 + $0xd0] sm:$0xff] %v1742_v27  ;;  %v1661_v36 = vadd.f32 %v1660_v31, %v1436_v37 }
 0x2a2   : > { %v1440_v38 = vpop.f32.mrb[120].mxu0 }
 0x2a3   : > { %v1743_v35 = vadd.f32 %v3145_v22, %v1661_v36  ;;  %v1441_v33 = vadd.f32 %v1440_v38, %v3132_v50  ;;  %v1442_v44 = vpop.f32.mrb[121].mxu0  ;;  %v1665_v3 = vpop.f32.mrb[120].mxu1 }
 0x2a4   : > { %v1667_v14 = vpop.f32.mrb[121].mxu1 }
 0x2a5   : > { %1775 = vst [vmem:[%s3149_s9 + $0xd8] sm:$0xff] %v1743_v35  ;;  %v1666_v39 = vadd.f32 %v1665_v3, %v1441_v33 }
 0x2a6   : > { %v1445_v40 = vpop.f32.mrb[122].mxu0 }
 0x2a7   : > { %v1744_v41 = vadd.f32 %v3145_v22, %v1666_v39  ;;  %v1446_v45 = vadd.f32 %v1445_v40, %v3134_v58  ;;  %v1447_v46 = vpop.f32.mrb[123].mxu0  ;;  %v1670_v49 = vpop.f32.mrb[122].mxu1 }
 0x2a8   : > { %v1672_v47 = vpop.f32.mrb[123].mxu1 }
 0x2a9   : > { %1776 = vst [vmem:[%s3149_s9 + $0xe0] sm:$0xff] %v1744_v41  ;;  %v1671_v9 = vadd.f32 %v1670_v49, %v1446_v45 }
 0x2aa   : > { %v1450_v48 = vpop.f32.mrb[124].mxu0 }
 0x2ab   : > { %v1745_v50 = vadd.f32 %v3145_v22, %v1671_v9  ;;  %v1451_v23 = vadd.f32 %v1450_v48, %v3136_v4  ;;  %v1452_v42 = vpop.f32.mrb[125].mxu0  ;;  %v1675_v52 = vpop.f32.mrb[124].mxu1 }
 0x2ac   : > { %v1677_v56 = vpop.f32.mrb[125].mxu1 }
 0x2ad   : > { %1777 = vst [vmem:[%s3149_s9 + $0xe8] sm:$0xff] %v1745_v50  ;;  %v1676_v58 = vadd.f32 %v1675_v52, %v1451_v23 }
 0x2ae   : > { %v1455_v54 = vpop.f32.mrb[126].mxu0 }
 0x2af   : > { %v1746_v55 = vadd.f32 %v3145_v22, %v1676_v58  ;;  %v1456_v13 = vadd.f32 %v1455_v54, %v3138_v0  ;;  %v1457_v57 = vpop.f32.mrb[127].mxu0  ;;  %v1680_v59 = vpop.f32.mrb[126].mxu1 }
 0x2b0   : > { %v1682_v32 = vpop.f32.mrb[127].mxu1 }
 0x2b1   : > { %1778 = vst [vmem:[%s3149_s9 + $0xf0] sm:$0xff] %v1746_v55  ;;  %v1681_v4 = vadd.f32 %v1680_v59, %v1456_v13 }
 0x2b3   : > { %v1747_v63 = vadd.f32 %v3145_v22, %v1681_v4 }
 0x2b5   : > { %1779 = vst [vmem:[%s3149_s9 + $0xf8] sm:$0xff] %v1747_v63 }
 0x2b6   : > { %2374 = shalt.err (!%p2371_p7)
}
 0x2b7   : > { %s2375_s30 = scalar_lea.hbm %s3247_s2, 4096  ;;  %s2379_s3 = scalar_lea.hbm %s3305_s5, 8192 }
 0x2b8   : > { %p2376_p11 = scmp.ne.s32.totalorder %s3247_s2, %s2375_s30  ;;  %p2380_p12 = scmp.lt.u32.totalorder %s3247_s2, %s3305_s5 }
 0x2b9   : > { %p2381_p13 = scmp.lt.u32.totalorder %s2379_s3, %s2375_s30  ;;  %p2383_p1 = scmp.lt.u32.totalorder %s2375_s30, %s3247_s2 }
 0x2ba   : > { %p2377_p2 = pnand %p2376_p11, %p3331_p6 }
 0x2bb   : > { %p2382_p0 = por %p2381_p13, %p2380_p12 }
 0x2bc   : > { %p2378_p8 = pneg %p2377_p2 }
 0x2bd   : > { %p2384_p10 = por %p2383_p1, %p2382_p0 }
 0x2bf   : > { %p2385_p3 = pnand %p2384_p10, %p2378_p8 }
 0x2c1   : > { %2388 = shalt.err (!%p2385_p3)
}
 0x2c2   : > { %s2467_s26 = smov 128   ;;  %s2468_s16 = smov 8  }
 0x2c3   : > { %2162 = dma.vmem_to_hbm [thread:$0]  (%p3331_p6), %s3249_s12, 4096, %s3247_s2, %s1781_s8, %s2467_s26, %s2467_s26, %s2468_s16  }
 0x2c4 PF: > { %s1809_s9 = sand.u32 1, %s2435_s18   ;;  %p3332_p4 = scmp.ne.s32.totalorder %s3315_s27, 0 }
 0x2c5   : > { %p3333_p9 = scmp.ge.s32.totalorder %s2455_s23, 2  ;;  %s1810_s13 = scalar_lea.sflag [#allocation4], %s1809_s9 }
 0x2c7   : > { %p2179_p5 = pnand %p3333_p9, %p3332_p4 }
 0x2c9   : > { %2430 = dma.done.wait (!%p2179_p5), %s1810_s13, 4096  }
 0x2ca   : > { %2432 = vsyncadd (!%p2179_p5), %s1810_s13, 4294963200  ;;  %s25_s23 = sadd.s32 1, %s2455_s23   ;;  %s3334_s6 = sld [smem:[#allocation16_spill]] }
 0x2cb   : > { %p22_p7 = scmp.ge.s32.totalorder %s25_s23, 4   ;;  %s3335_s18 = smov %s2439_s19 }
 0x2cc   : > { %s3336_s19 = smov %s2443_s20  ;;  %s3337_s20 = smov %s2639_s25 }
 0x2cd   : > { %s3338_s21 = smov %s2451_s22  ;;  %24 = sbr.rel (!%p22_p7) target bundleno = 13 (0xd), region = 112 }
 0x2d0   : > { %s3339_s22 = smov %s3334_s6 }
 0x2d4   :  { %1815 = vsyncpa [#allocation3], 1 }
 0x2d5   :  { %1817 = vsyncpa [#allocation3 + $0x1], 1 }
 0x2d6   :  { %1818 = vsyncpa [#allocation6], 1 }
 0x2d7   :  { %1820 = vsyncpa [#allocation6 + $0x1], 1 }
 0x2d8   :  { %1821 = vsyncpa [#allocation9], 1 }
 0x2d9   :  { %1822 = vsyncpa [#allocation4], 1 }
 0x2da   :  { %1824 = vsyncpa [#allocation4 + $0x1], 1 }

</bundles_post_ra>
